<compile_context>
chip_gen: v5e
topology: v5e:2x2
jax: 0.10.0
libtpu: 0.0.40
codegen_flags: <defaults>
</compile_context>

<pallas_src>
import functools

import jax
import jax.numpy as jnp
from jax.experimental import pallas as pl
from jax.experimental.pallas import tpu as pltpu

_P = 256  # proposals per image -- hard-coded by the module's .repeat(1, 256, 1)


def _choose_images_per_tile(batch, channels):
    """Pick G (images per grid step, rows = G*256).

    Targets 1024-2048 rows per step (HBM-roofline sweet spot), requires G | batch,
    keeps >= 2 grid steps when batch >= 2 (megacore sharding on v7x), and bounds
    the double-buffered VMEM working set (x block + three lane-padded output
    blocks) so the tile fits comfortably on v5e/v6e/v7x.
    """
    if batch <= 1:
        return 1
    c_pad = max(128, ((channels + 127) // 128) * 128)

    def working_set(g):
        t = g * _P
        # x double-buffered + 3 outputs (lane-padded to 128) double-buffered
        return 2 * t * c_pad * 4 + 2 * 3 * t * 128 * 4

    budget = 14 << 20  # weights/offset tables are small and accounted in the 32 MiB limit
    g = 1
    for cand in range(1, min(8, batch // 2) + 1):
        if batch % cand == 0 and working_set(cand) <= budget:
            g = cand
    return g


def _joint_head_kernel(x_ref, wcx_ref, wbb_ref, soff_ref, ooff_ref, bbias_ref,
                       subj_ref, obj_ref, bbox_ref, *, images_per_tile):
    # x_ref    : (G*256, C)   G images' ROI features
    # wcx_ref  : (C, nc)      W_cls[:, :C].T          (VMEM-resident)
    # wbb_ref  : (C, 4*nc)    W_bbox.T                (VMEM-resident)
    # soff_ref : (B, nc)      per-image subj offsets  (VMEM-resident)
    # ooff_ref : (B, nc)      per-image obj  offsets  (VMEM-resident)
    # bbias_ref: (1, 4*nc)    bbox bias               (VMEM-resident)
    # subj_ref / obj_ref : (G*256, nc)   outputs
    # bbox_ref           : (G*256, 4*nc) output
    i = pl.program_id(0)
    g = images_per_tile

    x = x_ref[...]                                                       # (T, C)
    cls_x = jnp.dot(x, wcx_ref[...], preferred_element_type=jnp.float32)  # (T, nc)
    bbx = jnp.dot(x, wbb_ref[...], preferred_element_type=jnp.float32)    # (T, 4nc)

    t, nc = cls_x.shape
    rows_per_img = t // g                                                # == 256

    # this tile's per-image offsets (g rows of the resident (B, nc) tables)
    soff = soff_ref[pl.ds(i * g, g), :]                                  # (g, nc)
    ooff = ooff_ref[pl.ds(i * g, g), :]                                  # (g, nc)

    # broadcast-add the per-image offset over each image's 256 rows; the
    # (T, nc) -> (g, 256, nc) reshape never crosses an (8,128) tile boundary.
    cls3 = cls_x.reshape(g, rows_per_img, nc)
    subj_ref[...] = (cls3 + soff[:, None, :]).reshape(t, nc)
    obj_ref[...] = (cls3 + ooff[:, None, :]).reshape(t, nc)
    bbox_ref[...] = bbx + bbias_ref[...]


def fast_rcnn_predictor_joint(x, subject, obj, w_cls, b_cls, w_bbox, b_bbox,
                              num_classes=2):
    """JAX/Pallas equivalent of FastRCNNPredictorJoint.forward.

    x       : (N, C) or (N, C, 1, 1) float32,  N must equal B * 256
    subject : (B, 256) float32
    obj     : (B, 256) float32
    w_cls   : (num_classes, C + 256)   (PyTorch nn.Linear weight layout)
    b_cls   : (num_classes,)
    w_bbox  : (num_classes * 4, C)
    b_bbox  : (num_classes * 4,)
    Returns (x_subj, x_obj, bbox_deltas) with shapes (N,nc), (N,nc), (N,4nc).
    """
    if x.ndim == 4:
        assert x.shape[2] == 1 and x.shape[3] == 1
    x = x.reshape(x.shape[0], -1).astype(jnp.float32)     # flatten(start_dim=1)
    N, C = x.shape
    B = subject.shape[0]
    assert N == B * _P, "module hard-codes 256 proposals per image"
    assert w_cls.shape[1] == C + 256

    nc = num_classes
    f32 = jnp.float32
    hi = jax.lax.Precision.HIGHEST

    # --- tiny per-image precompute (B rows; kept out of the hot kernel) -------
    # Offset-folding: x_subj = x @ Wx + (subject @ Ws + b) -- HIGHEST precision
    # on the folded (B,256)x(256,nc) matmuls so f32 drift vs. PyTorch stays tiny.
    w_cls_x = jnp.transpose(w_cls[:, :C]).astype(f32)                 # (C, nc)
    w_cls_s = jnp.transpose(w_cls[:, C:]).astype(f32)                 # (256, nc)
    subj_off = jnp.dot(subject.astype(f32), w_cls_s, precision=hi) + b_cls.astype(f32)
    obj_off = jnp.dot(obj.astype(f32), w_cls_s, precision=hi) + b_cls.astype(f32)
    w_bbox_t = jnp.transpose(w_bbox).astype(f32)                      # (C, 4nc)
    bbox_bias = b_bbox.astype(f32).reshape(1, 4 * nc)                 # (1, 4nc)

    g = _choose_images_per_tile(B, C)
    tile_rows = g * _P
    grid = (N // tile_rows,)

    flops = 2 * N * C * (5 * nc) + 6 * N * nc
    bytes_accessed = 4 * (N * C + N * 6 * nc + C * 5 * nc + 2 * B * nc + 4 * nc)

    kernel = functools.partial(_joint_head_kernel, images_per_tile=g)

    x_subj, x_obj, bbox_deltas = pl.pallas_call(
        kernel,
        out_shape=(
            jax.ShapeDtypeStruct((N, nc), jnp.float32),
            jax.ShapeDtypeStruct((N, nc), jnp.float32),
            jax.ShapeDtypeStruct((N, 4 * nc), jnp.float32),
        ),
        grid=grid,
        in_specs=[
            pl.BlockSpec((tile_rows, C), lambda i: (i, 0)),     # x: G images per step
            pl.BlockSpec((C, nc), lambda i: (0, 0)),            # W_cls_x   (resident)
            pl.BlockSpec((C, 4 * nc), lambda i: (0, 0)),        # W_bbox.T  (resident)
            pl.BlockSpec((B, nc), lambda i: (0, 0)),            # subj offsets (resident)
            pl.BlockSpec((B, nc), lambda i: (0, 0)),            # obj offsets  (resident)
            pl.BlockSpec((1, 4 * nc), lambda i: (0, 0)),        # bbox bias    (resident)
        ],
        out_specs=(
            pl.BlockSpec((tile_rows, nc), lambda i: (i, 0)),
            pl.BlockSpec((tile_rows, nc), lambda i: (i, 0)),
            pl.BlockSpec((tile_rows, 4 * nc), lambda i: (i, 0)),
        ),
        compiler_params=pltpu.CompilerParams(
            dimension_semantics=("parallel",),        # shard tiles across TCs on v7x
            vmem_limit_bytes=32 * 1024 * 1024,        # keep big tiles double-buffered on v5e
        ),
        cost_estimate=pl.CostEstimate(flops=flops, transcendentals=0,
                                      bytes_accessed=bytes_accessed),
    )(x, w_cls_x, w_bbox_t, subj_off, obj_off, bbox_bias)

    return x_subj, x_obj, bbox_deltas


if __name__ == "__main__":
    # Small deterministic example (exercises G=2 images per tile, grid of 2).
    B = 4                 # images
    N = B * _P            # 1024 proposals total
    C = 128               # in_channels
    NUM_CLASSES = 2

    key = jax.random.PRNGKey(0)
    kx, ks, ko, kwc, kbc, kwb, kbb = jax.random.split(key, 7)

    # inputs (exercise the 4-D NCHW path with trailing 1x1, as in the module)
    x = jax.random.normal(kx, (N, C, 1, 1), dtype=jnp.float32)
    subject = jax.random.normal(ks, (B, 256), dtype=jnp.float32)
    obj = jax.random.normal(ko, (B, 256), dtype=jnp.float32)

    # deterministic parameters (nn.Linear-style uniform init)
    bound_cls = 1.0 / jnp.sqrt(C + 256.0)
    w_cls = jax.random.uniform(kwc, (NUM_CLASSES, C + 256),
                               minval=-bound_cls, maxval=bound_cls,
                               dtype=jnp.float32)
    b_cls = jax.random.uniform(kbc, (NUM_CLASSES,),
                               minval=-bound_cls, maxval=bound_cls,
                               dtype=jnp.float32)
    bound_bb = 1.0 / jnp.sqrt(float(C))
    w_bbox = jax.random.uniform(kwb, (NUM_CLASSES * 4, C),
                                minval=-bound_bb, maxval=bound_bb,
                                dtype=jnp.float32)
    b_bbox = jax.random.uniform(kbb, (NUM_CLASSES * 4,),
                                minval=-bound_bb, maxval=bound_bb,
                                dtype=jnp.float32)

    x_subj, x_obj, bbox = fast_rcnn_predictor_joint(
        x, subject, obj, w_cls, b_cls, w_bbox, b_bbox, num_classes=NUM_CLASSES)
    jax.block_until_ready((x_subj, x_obj, bbox))

    # reference in plain JAX (mirrors the PyTorch forward exactly)
    hi = jax.lax.Precision.HIGHEST
    xf = x.reshape(N, C)
    s_rep = jnp.repeat(subject, _P, axis=0)
    o_rep = jnp.repeat(obj, _P, axis=0)
    ref_subj = jnp.dot(jnp.concatenate([xf, s_rep], axis=-1), w_cls.T, precision=hi) + b_cls
    ref_obj = jnp.dot(jnp.concatenate([xf, o_rep], axis=-1), w_cls.T, precision=hi) + b_cls
    ref_bbox = jnp.dot(xf, w_bbox.T, precision=hi) + b_bbox

    assert x_subj.shape == (N, NUM_CLASSES)
    assert x_obj.shape == (N, NUM_CLASSES)
    assert bbox.shape == (N, NUM_CLASSES * 4)
    assert jnp.allclose(x_subj, ref_subj, atol=1e-4, rtol=1e-4)
    assert jnp.allclose(x_obj, ref_obj, atol=1e-4, rtol=1e-4)
    assert jnp.allclose(bbox, ref_bbox, atol=1e-4, rtol=1e-4)

    print("KERNEL_OK")
</pallas_src>

<mosaic_0001>
module attributes {stable_mosaic.version = 11 : i64} {
  func.func @_joint_head_kernel(%arg0: i32, %arg1: memref<512x128xf32, #tpu.memory_space<vmem>>, %arg2: memref<128x2xf32, #tpu.memory_space<vmem>>, %arg3: memref<128x8xf32, #tpu.memory_space<vmem>>, %arg4: memref<4x2xf32, #tpu.memory_space<vmem>>, %arg5: memref<4x2xf32, #tpu.memory_space<vmem>>, %arg6: memref<1x8xf32, #tpu.memory_space<vmem>>, %arg7: memref<512x2xf32, #tpu.memory_space<vmem>>, %arg8: memref<512x2xf32, #tpu.memory_space<vmem>>, %arg9: memref<512x8xf32, #tpu.memory_space<vmem>>) attributes {dimension_semantics = [#tpu.dimension_semantics<parallel>], iteration_bounds = array<i64: 2>, scalar_prefetch = 0 : i64, scratch_operands = 0 : i64, tpu.core_type = #tpu.core_type<tc>, window_params = [{transform_indices = @transform_0, window_bounds = array<i64: 512, 128>}, {pipeline_mode = #tpu.pipeline_mode<synchronous>, transform_indices = @transform_1, window_bounds = array<i64: 128, 2>}, {pipeline_mode = #tpu.pipeline_mode<synchronous>, transform_indices = @transform_2, window_bounds = array<i64: 128, 8>}, {pipeline_mode = #tpu.pipeline_mode<synchronous>, transform_indices = @transform_3, window_bounds = array<i64: 4, 2>}, {pipeline_mode = #tpu.pipeline_mode<synchronous>, transform_indices = @transform_4, window_bounds = array<i64: 4, 2>}, {pipeline_mode = #tpu.pipeline_mode<synchronous>, transform_indices = @transform_5, window_bounds = array<i64: 1, 8>}, {transform_indices = @transform_6, window_bounds = array<i64: 512, 2>}, {transform_indices = @transform_7, window_bounds = array<i64: 512, 2>}, {transform_indices = @transform_8, window_bounds = array<i64: 512, 8>}]} {
    %c0 = arith.constant 0 : index
    %c0_0 = arith.constant 0 : index
    %0 = vector.load %arg1[%c0, %c0_0] : memref<512x128xf32, #tpu.memory_space<vmem>>, vector<512x128xf32>
    %c0_1 = arith.constant 0 : index
    %c0_2 = arith.constant 0 : index
    %1 = vector.load %arg2[%c0_1, %c0_2] : memref<128x2xf32, #tpu.memory_space<vmem>>, vector<128x2xf32>
    %cst = arith.constant dense<0.000000e+00> : vector<512x2xf32>
    %2 = tpu.matmul %0, %1, %cst {dimension_numbers = #tpu.dot_dimension_numbers<[1], [0], [0], [1], [0, 0, 1, 1], [], []>} : vector<512x128xf32>, vector<128x2xf32>, vector<512x2xf32> -> vector<512x2xf32>
    %c0_3 = arith.constant 0 : index
    %c0_4 = arith.constant 0 : index
    %3 = vector.load %arg3[%c0_3, %c0_4] : memref<128x8xf32, #tpu.memory_space<vmem>>, vector<128x8xf32>
    %cst_5 = arith.constant dense<0.000000e+00> : vector<512x8xf32>
    %4 = tpu.matmul %0, %3, %cst_5 {dimension_numbers = #tpu.dot_dimension_numbers<[1], [0], [0], [1], [0, 0, 1, 1], [], []>} : vector<512x128xf32>, vector<128x8xf32>, vector<512x8xf32> -> vector<512x8xf32>
    %c2_i32 = arith.constant 2 : i32
    %5 = arith.muli %arg0, %c2_i32 : i32
    %6 = arith.index_cast %5 : i32 to index
    %c0_6 = arith.constant 0 : index
    %7 = vector.load %arg4[%6, %c0_6] : memref<4x2xf32, #tpu.memory_space<vmem>>, vector<2x2xf32>
    %c2_i32_7 = arith.constant 2 : i32
    %8 = arith.muli %arg0, %c2_i32_7 : i32
    %9 = arith.index_cast %8 : i32 to index
    %c0_8 = arith.constant 0 : index
    %10 = vector.load %arg5[%9, %c0_8] : memref<4x2xf32, #tpu.memory_space<vmem>>, vector<2x2xf32>
    %11 = vector.shape_cast %2 : vector<512x2xf32> to vector<2x256x2xf32>
    %12 = vector.shape_cast %7 : vector<2x2xf32> to vector<2x1x2xf32>
    %13 = vector.broadcast %12 : vector<2x1x2xf32> to vector<2x256x2xf32>
    %14 = arith.addf %11, %13 : vector<2x256x2xf32>
    %15 = vector.shape_cast %14 : vector<2x256x2xf32> to vector<512x2xf32>
    %c0_9 = arith.constant 0 : index
    %c0_10 = arith.constant 0 : index
    %16 = vector.load %arg7[%c0_9, %c0_10] : memref<512x2xf32, #tpu.memory_space<vmem>>, vector<512x2xf32>
    tpu.vector_store %arg7[%c0_9, %c0_10], %15 {strides = array<i32>} : memref<512x2xf32, #tpu.memory_space<vmem>>, vector<512x2xf32>,
    %17 = vector.shape_cast %10 : vector<2x2xf32> to vector<2x1x2xf32>
    %18 = vector.broadcast %17 : vector<2x1x2xf32> to vector<2x256x2xf32>
    %19 = arith.addf %11, %18 : vector<2x256x2xf32>
    %20 = vector.shape_cast %19 : vector<2x256x2xf32> to vector<512x2xf32>
    %c0_11 = arith.constant 0 : index
    %c0_12 = arith.constant 0 : index
    %21 = vector.load %arg8[%c0_11, %c0_12] : memref<512x2xf32, #tpu.memory_space<vmem>>, vector<512x2xf32>
    tpu.vector_store %arg8[%c0_11, %c0_12], %20 {strides = array<i32>} : memref<512x2xf32, #tpu.memory_space<vmem>>, vector<512x2xf32>,
    %c0_13 = arith.constant 0 : index
    %c0_14 = arith.constant 0 : index
    %22 = vector.load %arg6[%c0_13, %c0_14] : memref<1x8xf32, #tpu.memory_space<vmem>>, vector<1x8xf32>
    %23 = vector.broadcast %22 : vector<1x8xf32> to vector<512x8xf32>
    %24 = arith.addf %4, %23 : vector<512x8xf32>
    %c0_15 = arith.constant 0 : index
    %c0_16 = arith.constant 0 : index
    %25 = vector.load %arg9[%c0_15, %c0_16] : memref<512x8xf32, #tpu.memory_space<vmem>>, vector<512x8xf32>
    tpu.vector_store %arg9[%c0_15, %c0_16], %24 {strides = array<i32>} : memref<512x8xf32, #tpu.memory_space<vmem>>, vector<512x8xf32>,
    return
  }
  func.func @transform_0(%arg0: i32) -> (i32, i32) {
    %c0_i32 = arith.constant 0 : i32
    %c0_i32_0 = arith.constant 0 : i32
    return %arg0, %c0_i32 : i32, i32
  }
  func.func @transform_1(%arg0: i32) -> (i32, i32) {
    %c0_i32 = arith.constant 0 : i32
    %c0_i32_0 = arith.constant 0 : i32
    %c0_i32_1 = arith.constant 0 : i32
    return %c0_i32, %c0_i32_0 : i32, i32
  }
  func.func @transform_2(%arg0: i32) -> (i32, i32) {
    %c0_i32 = arith.constant 0 : i32
    %c0_i32_0 = arith.constant 0 : i32
    %c0_i32_1 = arith.constant 0 : i32
    return %c0_i32, %c0_i32_0 : i32, i32
  }
  func.func @transform_3(%arg0: i32) -> (i32, i32) {
    %c0_i32 = arith.constant 0 : i32
    %c0_i32_0 = arith.constant 0 : i32
    %c0_i32_1 = arith.constant 0 : i32
    return %c0_i32, %c0_i32_0 : i32, i32
  }
  func.func @transform_4(%arg0: i32) -> (i32, i32) {
    %c0_i32 = arith.constant 0 : i32
    %c0_i32_0 = arith.constant 0 : i32
    %c0_i32_1 = arith.constant 0 : i32
    return %c0_i32, %c0_i32_0 : i32, i32
  }
  func.func @transform_5(%arg0: i32) -> (i32, i32) {
    %c0_i32 = arith.constant 0 : i32
    %c0_i32_0 = arith.constant 0 : i32
    %c0_i32_1 = arith.constant 0 : i32
    return %c0_i32, %c0_i32_0 : i32, i32
  }
  func.func @transform_6(%arg0: i32) -> (i32, i32) {
    %c0_i32 = arith.constant 0 : i32
    %c0_i32_0 = arith.constant 0 : i32
    return %arg0, %c0_i32 : i32, i32
  }
  func.func @transform_7(%arg0: i32) -> (i32, i32) {
    %c0_i32 = arith.constant 0 : i32
    %c0_i32_0 = arith.constant 0 : i32
    return %arg0, %c0_i32 : i32, i32
  }
  func.func @transform_8(%arg0: i32) -> (i32, i32) {
    %c0_i32 = arith.constant 0 : i32
    %c0_i32_0 = arith.constant 0 : i32
    return %arg0, %c0_i32 : i32, i32
  }
}

</mosaic_0001>

<bundles_post_ra>
// kernel: tpu_custom_call.1
= control target key start
LH: loop header
LB: loop body
LE: loop exit
PB: predicated region body
PF: predicated region fallthrough
CT: control target
= control target key end

     0   :  { %14 = vsyncpa [#allocation3], 0  ;;  %s2426_s0 = inlined_call_operand.hbm [shape: f32[1024,128], index: 0, kind: input, shape index: {}]   ;;  %s2427_s1 = inlined_call_operand.vmem [shape: f32[128,2], index: 1, kind: input, shape index: {}]   ;;  %s2428_s2 = inlined_call_operand.vmem [shape: f32[128,8], index: 2, kind: input, shape index: {}]   ;;  %s2429_s3 = inlined_call_operand.vmem [shape: f32[4,2], index: 3, kind: input, shape index: {}]   ;;  %s2430_s4 = inlined_call_operand.vmem [shape: f32[4,2], index: 4, kind: input, shape index: {}]   ;;  %s2431_s5 = inlined_call_operand.vmem [shape: f32[1,8], index: 5, kind: input, shape index: {}]   ;;  %s2432_s6 = inlined_call_operand.vmem [shape: f32[1024,2], index: 6, kind: output, shape index: {0}]   ;;  %s2433_s7 = inlined_call_operand.vmem [shape: f32[1024,2], index: 7, kind: output, shape index: {1}]   ;;  %s2434_s8 = inlined_call_operand.vmem [shape: f32[1024,8], index: 8, kind: output, shape index: {2}]  }
   0x1   :  { %16 = vsyncpa [#allocation3 + $0x1], 0  ;;  %s1560_s27 = smov 0   ;;  %s1562_s28 = smov 0  }
   0x2   :  { %s1564_s29 = smov 0   ;;  %s1566_s30 = smov 0  }
   0x3 LB: > { %s1579_s9 = sadd.s32 4294967295, %s1511_s30   ;;  %s1582_s10 = sadd.s32 1, %s1511_s30   ;;  %s1511_s30 = sphi %s1566_s30, %s2441_s30   ;;  %s1507_s29 = sphi %s1564_s29, %s2440_s29   ;;  %s1503_s28 = sphi %s1562_s28, %s2439_s28   ;;  %s1499_s27 = sphi %s1560_s27, %s2438_s27  }
   0x4   : > { %s26_s11 = ssub.s32 %s1511_s30, %s1582_s10  ;;  %s29_s12 = sadd.s32 1, %s1507_s29 }
   0x5   : > { %p27_p0 = scmp.eq.s32.totalorder %s26_s11, 0  ;;  %p36_p1 = scmp.ne.s32.totalorder %s1507_s29, %s1503_s28 }
   0x6   : > { %p37_p2 = scmp.eq.s32.totalorder %s1511_s30, 0  ;;  %p42_p3 = scmp.ne.s32.totalorder %s1503_s28, %s1499_s27 }
   0x7   : > { %s1592_s13 = scalar_select %p27_p0, %s1507_s29, %s29_s12  }
   0x8   : > { %p1594_p4 = por %p37_p2, %p36_p1  ;;  %p43_p5 = scmp.eq.s32.totalorder %s1579_s9, 0 }
   0x9   : > { %p1410_p6 = scmp.lt.s32.totalorder %s1511_s30, 2  ;;  %s264_s16 = sand.u32 1, %s1507_s29  }
   0xa   : > { %p1600_p7 = por %p43_p5, %p42_p3  ;;  %s1357_s17 = sshll.u32 %s264_s16, 9 }
   0xb   : > { %s1371_s18 = sshll.u32 %s1511_s30, 9  ;;  %s268_s22 = scalar_lea.vmem [#allocation2], %s1357_s17 }
   0xc   : > { %s273_s21 = scalar_lea.hbm %s2426_s0, %s1371_s18  ;;  %s276_s23 = sshll.u32 %s268_s22, 4  ;;  %s277_s23 = int_to_ptr.vmem [resolvable:$true] %s276_s23 }
   0xd   : > { %s274_s24 = sshll.u32 %s273_s21, 4  ;;  %p1611_p8 = pnand %p1410_p6, %p1594_p4  ;;  %s275_s24 = int_to_ptr.hbm [resolvable:$true] %s274_s24 }
   0xe   : > { %p1360_p9 = scmp.ge.s32.totalorder %s1511_s30, 1  ;;  %s265_s26 = scalar_lea.sflag [#allocation3], %s264_s16 }
   0xf   : > { %s1447_s27 = sshra.s32 %s275_s24, 4  ;;  %p1451_p11 = pneg %p1611_p8  ;;  %s1448_s27 = int_to_ptr.hbm [resolvable:$true] %s1447_s27 }
  0x10   : > { %s1449_s11 = scalar_lea.hbm %s1448_s27, 512  ;;  %s1454_s18 = scalar_lea.hbm %s2426_s0, 1024 }
  0x11   : > { %p1450_p10 = scmp.ne.s32.totalorder %s1448_s27, %s1449_s11  ;;  %p1455_p0 = scmp.lt.s32.totalorder %s1448_s27, %s2426_s0 }
  0x12   : > { %p1456_p1 = scmp.lt.s32.totalorder %s1454_s18, %s1449_s11 }
  0x13   : > { %p1452_p12 = pnand %p1451_p11, %p1450_p10 }
  0x14   : > { %p1457_p2 = por %p1456_p1, %p1455_p0 }
  0x15   : > { %p1453_p13 = pneg %p1452_p12 }
  0x17   : > { %p1458_p3 = pnand %p1457_p2, %p1453_p13 }
  0x19   : > { %1461 = shalt.err (!%p1458_p3)
}
  0x1a   : > { %s1513_s16 = smov 128   ;;  %s1514_s20 = smov 8  }
  0x1b   : > { %1409 = dma.hbm_to_vmem [thread:$0]  (!%p1611_p8), %s275_s24, 8192, %s277_s23, %s265_s26, %s1513_s16, %s1513_s16, %s1514_s20  }
  0x1c   : > { %p284_p4 = scmp.lt.s32.totalorder %s1511_s30, 3 }
  0x1e   : > { %p285_p5 = pnand %p1360_p9, %p284_p4 }
  0x1f   : > { %s290_s21 = sand.u32 (!%p285_p5), 1, %s1503_s28  }
  0x20   : > { %288 = sbr.rel (%p285_p5) target bundleno = 455 (0x1c7), region = 44  ;;  %s1361_s22 = sshll.u32 (!%p285_p5), %s290_s21, 9 }
  0x21   : > { %s291_s27 = scalar_lea.sflag (!%p285_p5), [#allocation3], %s290_s21  ;;  %s1630_s11 = scalar_lea.vmem (!%p285_p5), [#allocation2], %s1361_s22 }
  0x25   : > { %1494 = dma.done.wait (%p1600_p7), %s291_s27, 8192  }
  0x26   : > { %1496 = vsyncadd (%p1600_p7), %s291_s27, 4294959104  ;;  %v436_v0 = vld [vmem:[%s2427_s1 + $0x78] sm:$0xff]  ;;  %v435_v2 = vld [vmem:[%s2427_s1 + $0x70] sm:$0xff]  ;;  %s1362_s12 = sshll.u32 %s1579_s9, 6  ;;  %s1368_s17 = sshll.u32 %s1579_s9, 1  ;;  %vm737_vm0 = vcmask 15360  }
  0x27   : > { %v661_v1 = vld [vmem:[%s2428_s2 + $0x78] sm:$0xff]  ;;  %1372 = vmatpush.msra.mxu2 %v436_v0  ;;  %v660_v3 = vld [vmem:[%s2428_s2 + $0x70] sm:$0xff]  ;;  %v434_v4 = vld [vmem:[%s2427_s1 + $0x68] sm:$0xff]  ;;  %437 = vmatpush.msra.mxu0 %v436_v0  ;;  %p340_p6 = scmp.lt.s32.totalorder %s1362_s12, 127  ;;  %s663_s24 = scalar_lea.vmem %s2429_s3, %s1368_s17  ;;  %vm1149_vm1 = vcmask 64512  }
  0x28   : > { %1388 = vmatpush.msra.mxu3 %v661_v1  ;;  %v659_v5 = vld [vmem:[%s2428_s2 + $0x68] sm:$0xff]  ;;  %940 = vmatpush.msra.mxu1 %v661_v1  ;;  %v433_v6 = vld [vmem:[%s2427_s1 + $0x60] sm:$0xff]  ;;  %v432_v8 = vld [vmem:[%s2427_s1 + $0x58] sm:$0xff]  ;;  %s665_s18 = scalar_lea.vmem %s2430_s4, %s1368_s17 }
  0x29   : > { %1373 = vmatpush.msra.mxu2 %v435_v2  ;;  %v658_v7 = vld [vmem:[%s2428_s2 + $0x60] sm:$0xff]  ;;  %438 = vmatpush.msra.mxu0 %v435_v2  ;;  %v657_v9 = vld [vmem:[%s2428_s2 + $0x58] sm:$0xff]  ;;  %v431_v10 = vld [vmem:[%s2427_s1 + $0x50] sm:$0xff]  ;;  %s2443_s12 = smov (!%p340_p6, %s1362_s12), 127 }
  0x2a   : > { %1389 = vmatpush.msra.mxu3 %v660_v3  ;;  %941 = vmatpush.msra.mxu1 %v660_v3  ;;  %v656_v11 = vld [vmem:[%s2428_s2 + $0x50] sm:$0xff]  ;;  %v430_v12 = vld [vmem:[%s2427_s1 + $0x48] sm:$0xff]  ;;  %v429_v14 = vld [vmem:[%s2427_s1 + $0x40] sm:$0xff]  ;;  %s1363_s9 = sshll.u32 %s2443_s12, 3 }
  0x2b   : > { %1374 = vmatpush.msra.mxu2 %v434_v4  ;;  %439 = vmatpush.msra.mxu0 %v434_v4  ;;  %v655_v13 = vld [vmem:[%s2428_s2 + $0x48] sm:$0xff]  ;;  %v654_v15 = vld [vmem:[%s2428_s2 + $0x40] sm:$0xff]  ;;  %v428_v16 = vld [vmem:[%s2427_s1 + $0x38] sm:$0xff]  ;;  %s1785_s20 = scalar_lea.vmem %s2432_s6, %s1363_s9  ;;  %s1793_s27 = scalar_lea.vmem %s2433_s7, %s1363_s9 }
  0x2c   : > { %1390 = vmatpush.msra.mxu3 %v659_v5  ;;  %942 = vmatpush.msra.mxu1 %v659_v5  ;;  %v653_v17 = vld [vmem:[%s2428_s2 + $0x38] sm:$0xff]  ;;  %v427_v18 = vld [vmem:[%s2427_s1 + $0x30] sm:$0xff]  ;;  %v426_v20 = vld [vmem:[%s2427_s1 + $0x28] sm:$0xff]  ;;  %s1803_s23 = scalar_lea.vmem %s2434_s8, %s1363_s9 }
  0x2d   : > { %1375 = vmatpush.msra.mxu2 %v433_v6  ;;  %440 = vmatpush.msra.mxu0 %v433_v6  ;;  %v652_v19 = vld [vmem:[%s2428_s2 + $0x30] sm:$0xff]  ;;  %v651_v21 = vld [vmem:[%s2428_s2 + $0x28] sm:$0xff]  ;;  %v425_v22 = vld [vmem:[%s2427_s1 + $0x20] sm:$0xff] }
  0x2e   : > { %1391 = vmatpush.msra.mxu3 %v658_v7  ;;  %943 = vmatpush.msra.mxu1 %v658_v7  ;;  %v650_v23 = vld [vmem:[%s2428_s2 + $0x20] sm:$0xff]  ;;  %v424_v24 = vld [vmem:[%s2427_s1 + $0x18] sm:$0xff]  ;;  %v423_v26 = vld [vmem:[%s2427_s1 + $0x10] sm:$0xff] }
  0x2f   : > { %1376 = vmatpush.msra.mxu2 %v432_v8  ;;  %441 = vmatpush.msra.mxu0 %v432_v8  ;;  %v649_v25 = vld [vmem:[%s2428_s2 + $0x18] sm:$0xff]  ;;  %v648_v27 = vld [vmem:[%s2428_s2 + $0x10] sm:$0xff]  ;;  %v422_v28 = vld [vmem:[%s2427_s1 + $0x8] sm:$0xff] }
  0x30   : > { %1392 = vmatpush.msra.mxu3 %v657_v9  ;;  %944 = vmatpush.msra.mxu1 %v657_v9  ;;  %v647_v29 = vld [vmem:[%s2428_s2 + $0x8] sm:$0xff]  ;;  %v421_v30 = vld [vmem:[%s2427_s1] sm:$0xff]  ;;  %v391_v36 = vld [vmem:[%s1630_s11 + $0x110] sm:$0xff] }
  0x31   : > { %1377 = vmatpush.msra.mxu2 %v431_v10  ;;  %442 = vmatpush.msra.mxu0 %v431_v10  ;;  %v646_v31 = vld [vmem:[%s2428_s2] sm:$0xff]  ;;  %v390_v34 = vld [vmem:[%s1630_s11 + $0x108] sm:$0xff]  ;;  %v359_v37 = vld [vmem:[%s1630_s11 + $0x10] sm:$0xff] }
  0x32   : > { %1393 = vmatpush.msra.mxu3 %v656_v11  ;;  %945 = vmatpush.msra.mxu1 %v656_v11  ;;  %v389_v32 = vld [vmem:[%s1630_s11 + $0x100] sm:$0xff]  ;;  %v358_v35 = vld [vmem:[%s1630_s11 + $0x8] sm:$0xff]  ;;  %v392_v38 = vld [vmem:[%s1630_s11 + $0x118] sm:$0xff] }
  0x33   : > { %1378 = vmatpush.msra.mxu2 %v430_v12  ;;  %443 = vmatpush.msra.mxu0 %v430_v12  ;;  %v357_v33 = vld [vmem:[%s1630_s11] sm:$0xff]  ;;  %v360_v39 = vld [vmem:[%s1630_s11 + $0x18] sm:$0xff]  ;;  %v394_v42 = vld [vmem:[%s1630_s11 + $0x128] sm:$0xff] }
  0x34   : > { %1394 = vmatpush.msra.mxu3 %v655_v13  ;;  %946 = vmatpush.msra.mxu1 %v655_v13  ;;  %v393_v40 = vld [vmem:[%s1630_s11 + $0x120] sm:$0xff]  ;;  %v362_v43 = vld [vmem:[%s1630_s11 + $0x28] sm:$0xff]  ;;  %v395_v44 = vld [vmem:[%s1630_s11 + $0x130] sm:$0xff] }
  0x35   : > { %1379 = vmatpush.msra.mxu2 %v429_v14  ;;  %444 = vmatpush.msra.mxu0 %v429_v14  ;;  %v361_v41 = vld [vmem:[%s1630_s11 + $0x20] sm:$0xff]  ;;  %v363_v45 = vld [vmem:[%s1630_s11 + $0x30] sm:$0xff]  ;;  %v396_v46 = vld [vmem:[%s1630_s11 + $0x138] sm:$0xff] }
  0x36   : > { %1395 = vmatpush.msra.mxu3 %v654_v15  ;;  %947 = vmatpush.msra.mxu1 %v654_v15  ;;  %v364_v47 = vld [vmem:[%s1630_s11 + $0x38] sm:$0xff]  ;;  %v397_v48 = vld [vmem:[%s1630_s11 + $0x140] sm:$0xff]  ;;  %v398_v50 = vld [vmem:[%s1630_s11 + $0x148] sm:$0xff] }
  0x37   : > { %1380 = vmatpush.msra.mxu2 %v428_v16  ;;  %445 = vmatpush.msra.mxu0 %v428_v16  ;;  %v365_v49 = vld [vmem:[%s1630_s11 + $0x40] sm:$0xff]  ;;  %v366_v51 = vld [vmem:[%s1630_s11 + $0x48] sm:$0xff]  ;;  %v399_v52 = vld [vmem:[%s1630_s11 + $0x150] sm:$0xff] }
  0x38   : > { %1396 = vmatpush.msra.mxu3 %v653_v17  ;;  %948 = vmatpush.msra.mxu1 %v653_v17  ;;  %v367_v53 = vld [vmem:[%s1630_s11 + $0x50] sm:$0xff]  ;;  %v400_v54 = vld [vmem:[%s1630_s11 + $0x158] sm:$0xff]  ;;  %v401_v56 = vld [vmem:[%s1630_s11 + $0x160] sm:$0xff] }
  0x39   : > { %1381 = vmatpush.msra.mxu2 %v427_v18  ;;  %446 = vmatpush.msra.mxu0 %v427_v18  ;;  %v368_v55 = vld [vmem:[%s1630_s11 + $0x58] sm:$0xff]  ;;  %v369_v57 = vld [vmem:[%s1630_s11 + $0x60] sm:$0xff]  ;;  %v402_v58 = vld [vmem:[%s1630_s11 + $0x168] sm:$0xff] }
  0x3a   : > { %1397 = vmatpush.msra.mxu3 %v652_v19  ;;  %949 = vmatpush.msra.mxu1 %v652_v19  ;;  %v370_v59 = vld [vmem:[%s1630_s11 + $0x68] sm:$0xff]  ;;  %v403_v60 = vld [vmem:[%s1630_s11 + $0x170] sm:$0xff]  ;;  %v404_v62 = vld [vmem:[%s1630_s11 + $0x178] sm:$0xff] }
  0x3b   : > { %1382 = vmatpush.msra.mxu2 %v426_v20  ;;  %447 = vmatpush.msra.mxu0 %v426_v20  ;;  %v371_v61 = vld [vmem:[%s1630_s11 + $0x70] sm:$0xff]  ;;  %v372_v63 = vld [vmem:[%s1630_s11 + $0x78] sm:$0xff]  ;;  %v664_v0 = vld [vmem:[%s663_s24] sm:$0x3] }
  0x3c   : > { %1398 = vmatpush.msra.mxu3 %v651_v21  ;;  %950 = vmatpush.msra.mxu1 %v651_v21  ;;  %v666_v1 = vld [vmem:[%s665_s18] sm:$0x3]  ;;  %v668_v2 = vrot.slane %v664_v0, 1  ;;  %v1772_v3 = vperm.slane %v664_v0, 0  ;;  %v406_v21 = vld [vmem:[%s1630_s11 + $0x188] sm:$0xff] }
  0x3d   : > { %1383 = vmatpush.msra.mxu2 %v425_v22  ;;  %448 = vmatpush.msra.mxu0 %v425_v22  ;;  %v1774_v4 = vperm.slane %v666_v1, 0  ;;  %v803_v5 = vrot.slane %v666_v1, 1  ;;  %v1779_v6 = vld [vmem:[%s2431_s5] ss:$0 sm:$0xff] }
  0x3e   : > { %1399 = vmatpush.msra.mxu3 %v650_v23  ;;  %951 = vmatpush.msra.mxu1 %v650_v23  ;;  %v405_v7 = vld [vmem:[%s1630_s11 + $0x180] sm:$0xff]  ;;  %v1787_v9 = vperm.slane %v668_v2, 0 }
  0x3f   : > { %1384 = vmatpush.msra.mxu2 %v424_v24  ;;  %449 = vmatpush.msra.mxu0 %v424_v24  ;;  %v373_v11 = vld [vmem:[%s1630_s11 + $0x80] sm:$0xff]  ;;  %v1797_v14 = vperm.slane %v803_v5, 0  ;;  %v374_v24 = vld [vmem:[%s1630_s11 + $0x88] sm:$0xff] }
  0x40   : > { %1400 = vmatpush.msra.mxu3 %v649_v25  ;;  %952 = vmatpush.msra.mxu1 %v649_v25 }
  0x41   : > { %1385 = vmatpush.msra.mxu2 %v423_v26  ;;  %450 = vmatpush.msra.mxu0 %v423_v26 }
  0x42   : > { %1401 = vmatpush.msra.mxu3 %v648_v27  ;;  %953 = vmatpush.msra.mxu1 %v648_v27 }
  0x43   : > { %1386 = vmatpush.msra.mxu2 %v422_v28  ;;  %451 = vmatpush.msra.mxu0 %v422_v28 }
  0x44   : > { %1402 = vmatpush.msra.mxu3 %v647_v29  ;;  %954 = vmatpush.msra.mxu1 %v647_v29 }
  0x45   : > { %1387 = vmatpush.msra.mxu2 %v421_v30  ;;  %452 = vmatpush.msra.mxu0 %v421_v30 }
  0x46   : > { %1403 = vmatpush.msra.mxu3 %v646_v31  ;;  %549 = vmatmul.f32.vlgmr.msra.gmra.mxu2 %v389_v32 }
  0x47   : > { %1052 = vmatmul.f32.vlgmr.msra.gmra.mxu3 %v389_v32  ;;  %955 = vmatpush.msra.mxu1 %v646_v31 }
  0x48   : > { %453 = vmatmul.f32.vlgmr.msra.gmra.mxu0 %v357_v33  ;;  %956 = vmatmul.f32.vlgmr.msra.gmra.mxu1 %v357_v33  ;;  %v407_v33 = vld [vmem:[%s1630_s11 + $0x190] sm:$0xff] }
  0x4e   : > { %552 = vmatmul.f32.gmra.mxu2 %v390_v34 }
  0x4f   : > { %1055 = vmatmul.f32.gmra.mxu3 %v390_v34 }
  0x50   : > { %456 = vmatmul.f32.gmra.mxu0 %v358_v35  ;;  %959 = vmatmul.f32.gmra.mxu1 %v358_v35 }
  0x56   : > { %555 = vmatmul.f32.gmra.mxu2 %v391_v36 }
  0x57   : > { %1058 = vmatmul.f32.gmra.mxu3 %v391_v36  ;;  %v375_v36 = vld [vmem:[%s1630_s11 + $0x90] sm:$0xff] }
  0x58   : > { %459 = vmatmul.f32.gmra.mxu0 %v359_v37  ;;  %962 = vmatmul.f32.gmra.mxu1 %v359_v37 }
  0x5e   : > { %558 = vmatmul.f32.gmra.mxu2 %v392_v38 }
  0x5f   : > { %1061 = vmatmul.f32.gmra.mxu3 %v392_v38 }
  0x60   : > { %462 = vmatmul.f32.gmra.mxu0 %v360_v39  ;;  %965 = vmatmul.f32.gmra.mxu1 %v360_v39 }
  0x66   : > { %561 = vmatmul.f32.gmra.mxu2 %v393_v40 }
  0x67   : > { %1064 = vmatmul.f32.gmra.mxu3 %v393_v40 }
  0x68   : > { %465 = vmatmul.f32.gmra.mxu0 %v361_v41  ;;  %968 = vmatmul.f32.gmra.mxu1 %v361_v41 }
  0x6e   : > { %564 = vmatmul.f32.gmra.mxu2 %v394_v42 }
  0x6f   : > { %1067 = vmatmul.f32.gmra.mxu3 %v394_v42 }
  0x70   : > { %468 = vmatmul.f32.gmra.mxu0 %v362_v43  ;;  %971 = vmatmul.f32.gmra.mxu1 %v362_v43 }
  0x76   : > { %567 = vmatmul.f32.gmra.mxu2 %v395_v44 }
  0x77   : > { %1070 = vmatmul.f32.gmra.mxu3 %v395_v44 }
  0x78   : > { %471 = vmatmul.f32.gmra.mxu0 %v363_v45  ;;  %974 = vmatmul.f32.gmra.mxu1 %v363_v45  ;;  %v408_v45 = vld [vmem:[%s1630_s11 + $0x198] sm:$0xff] }
  0x7e   : > { %570 = vmatmul.f32.gmra.mxu2 %v396_v46 }
  0x7f   : > { %1073 = vmatmul.f32.gmra.mxu3 %v396_v46 }
  0x80   : > { %474 = vmatmul.f32.gmra.mxu0 %v364_v47  ;;  %977 = vmatmul.f32.gmra.mxu1 %v364_v47 }
  0x86   : > { %573 = vmatmul.f32.gmra.mxu2 %v397_v48 }
  0x87   : > { %1076 = vmatmul.f32.gmra.mxu3 %v397_v48  ;;  %v376_v48 = vld [vmem:[%s1630_s11 + $0x98] sm:$0xff] }
  0x88   : > { %477 = vmatmul.f32.gmra.mxu0 %v365_v49  ;;  %980 = vmatmul.f32.gmra.mxu1 %v365_v49 }
  0x8e   : > { %576 = vmatmul.f32.gmra.mxu2 %v398_v50 }
  0x8f   : > { %1079 = vmatmul.f32.gmra.mxu3 %v398_v50 }
  0x90   : > { %480 = vmatmul.f32.gmra.mxu0 %v366_v51  ;;  %983 = vmatmul.f32.gmra.mxu1 %v366_v51 }
  0x96   : > { %579 = vmatmul.f32.gmra.mxu2 %v399_v52 }
  0x97   : > { %1082 = vmatmul.f32.gmra.mxu3 %v399_v52 }
  0x98   : > { %483 = vmatmul.f32.gmra.mxu0 %v367_v53  ;;  %986 = vmatmul.f32.gmra.mxu1 %v367_v53 }
  0x9e   : > { %582 = vmatmul.f32.gmra.mxu2 %v400_v54 }
  0x9f   : > { %1085 = vmatmul.f32.gmra.mxu3 %v400_v54 }
  0xa0   : > { %486 = vmatmul.f32.gmra.mxu0 %v368_v55  ;;  %989 = vmatmul.f32.gmra.mxu1 %v368_v55 }
  0xa6   : > { %585 = vmatmul.f32.gmra.mxu2 %v401_v56 }
  0xa7   : > { %1088 = vmatmul.f32.gmra.mxu3 %v401_v56 }
  0xa8   : > { %489 = vmatmul.f32.gmra.mxu0 %v369_v57  ;;  %992 = vmatmul.f32.gmra.mxu1 %v369_v57  ;;  %v409_v57 = vld [vmem:[%s1630_s11 + $0x1a0] sm:$0xff] }
  0xae   : > { %588 = vmatmul.f32.gmra.mxu2 %v402_v58 }
  0xaf   : > { %1091 = vmatmul.f32.gmra.mxu3 %v402_v58 }
  0xb0   : > { %492 = vmatmul.f32.gmra.mxu0 %v370_v59  ;;  %995 = vmatmul.f32.gmra.mxu1 %v370_v59 }
  0xb6   : > { %591 = vmatmul.f32.gmra.mxu2 %v403_v60 }
  0xb7   : > { %1094 = vmatmul.f32.gmra.mxu3 %v403_v60  ;;  %v377_v60 = vld [vmem:[%s1630_s11 + $0xa0] sm:$0xff] }
  0xb8   : > { %495 = vmatmul.f32.gmra.mxu0 %v371_v61  ;;  %998 = vmatmul.f32.gmra.mxu1 %v371_v61 }
  0xbe   : > { %594 = vmatmul.f32.gmra.mxu2 %v404_v62 }
  0xbf   : > { %1097 = vmatmul.f32.gmra.mxu3 %v404_v62 }
  0xc0   : > { %498 = vmatmul.f32.gmra.mxu0 %v372_v63  ;;  %1001 = vmatmul.f32.gmra.mxu1 %v372_v63 }
  0xc5   : > { %v454_v8 = vpop.f32.mrf.mxu0  ;;  %v957_v10 = vpop.f32.mrf.mxu1 }
  0xc6   : > { %597 = vmatmul.f32.gmra.mxu2 %v405_v7  ;;  %v673_v12 = vadd.f32 %v1772_v3, %v454_v8  ;;  %v808_v13 = vadd.f32 %v1774_v4, %v454_v8  ;;  %v958_v15 = vadd.f32 %v1779_v6, %v957_v10  ;;  %v410_v8 = vld [vmem:[%s1630_s11 + $0x1a8] sm:$0xff] }
  0xc7   : > { %1100 = vmatmul.f32.gmra.mxu3 %v405_v7 }
  0xc8   : > { %738 = vst.msk [vmem:[%s1785_s20] sm:$0xff] %vm737_vm0, %v673_v12  ;;  %501 = vmatmul.f32.gmra.mxu0 %v373_v11  ;;  %1004 = vmatmul.f32.gmra.mxu1 %v373_v11  ;;  %v378_v12 = vld [vmem:[%s1630_s11 + $0xa8] sm:$0xff] }
  0xc9   : > { %872 = vst.msk [vmem:[%s1793_s27] sm:$0xff] %vm737_vm0, %v808_v13  ;;  %v550_v16 = vpop.f32.mrf.mxu2 }
  0xca   : > { %v1053_v17 = vpop.f32.mrf.mxu3  ;;  %v705_v18 = vadd.f32 %v1787_v9, %v550_v16  ;;  %v840_v19 = vadd.f32 %v1797_v14, %v550_v16  ;;  %1150 = vst.msk [vmem:[%s1803_s23] sm:$0xff] %vm1149_vm1, %v958_v15 }
  0xcb   : > { %v1054_v20 = vadd.f32 %v1779_v6, %v1053_v17 }
  0xcc   : > { %770 = vst.msk [vmem:[%s1785_s20 + $0x100] sm:$0xff] %vm737_vm0, %v705_v18 }
  0xcd   : > { %904 = vst.msk [vmem:[%s1793_s27 + $0x100] sm:$0xff] %vm737_vm0, %v840_v19  ;;  %v457_v22 = vpop.f32.mrf.mxu0  ;;  %v960_v23 = vpop.f32.mrf.mxu1 }
  0xce   : > { %1182 = vst.msk [vmem:[%s1803_s23 + $0x100] sm:$0xff] %vm1149_vm1, %v1054_v20  ;;  %600 = vmatmul.f32.gmra.mxu2 %v406_v21  ;;  %v674_v25 = vadd.f32 %v1772_v3, %v457_v22  ;;  %v809_v26 = vadd.f32 %v1774_v4, %v457_v22  ;;  %v961_v27 = vadd.f32 %v1779_v6, %v960_v23  ;;  %v411_v22 = vld [vmem:[%s1630_s11 + $0x1b0] sm:$0xff] }
  0xcf   : > { %1103 = vmatmul.f32.gmra.mxu3 %v406_v21 }
  0xd0   : > { %739 = vst.msk [vmem:[%s1785_s20 + $0x8] sm:$0xff] %vm737_vm0, %v674_v25  ;;  %504 = vmatmul.f32.gmra.mxu0 %v374_v24  ;;  %1007 = vmatmul.f32.gmra.mxu1 %v374_v24  ;;  %v379_v25 = vld [vmem:[%s1630_s11 + $0xb0] sm:$0xff] }
  0xd1   : > { %873 = vst.msk [vmem:[%s1793_s27 + $0x8] sm:$0xff] %vm737_vm0, %v809_v26  ;;  %v553_v28 = vpop.f32.mrf.mxu2 }
  0xd2   : > { %v1056_v29 = vpop.f32.mrf.mxu3  ;;  %v706_v30 = vadd.f32 %v1787_v9, %v553_v28  ;;  %v841_v31 = vadd.f32 %v1797_v14, %v553_v28  ;;  %1151 = vst.msk [vmem:[%s1803_s23 + $0x8] sm:$0xff] %vm1149_vm1, %v961_v27 }
  0xd3   : > { %v1057_v32 = vadd.f32 %v1779_v6, %v1056_v29 }
  0xd4   : > { %771 = vst.msk [vmem:[%s1785_s20 + $0x108] sm:$0xff] %vm737_vm0, %v706_v30 }
  0xd5   : > { %905 = vst.msk [vmem:[%s1793_s27 + $0x108] sm:$0xff] %vm737_vm0, %v841_v31  ;;  %v460_v34 = vpop.f32.mrf.mxu0  ;;  %v963_v35 = vpop.f32.mrf.mxu1 }
  0xd6   : > { %1183 = vst.msk [vmem:[%s1803_s23 + $0x108] sm:$0xff] %vm1149_vm1, %v1057_v32  ;;  %603 = vmatmul.f32.gmra.mxu2 %v407_v33  ;;  %v675_v37 = vadd.f32 %v1772_v3, %v460_v34  ;;  %v810_v38 = vadd.f32 %v1774_v4, %v460_v34  ;;  %v964_v39 = vadd.f32 %v1779_v6, %v963_v35  ;;  %v412_v34 = vld [vmem:[%s1630_s11 + $0x1b8] sm:$0xff] }
  0xd7   : > { %1106 = vmatmul.f32.gmra.mxu3 %v407_v33 }
  0xd8   : > { %740 = vst.msk [vmem:[%s1785_s20 + $0x10] sm:$0xff] %vm737_vm0, %v675_v37  ;;  %507 = vmatmul.f32.gmra.mxu0 %v375_v36  ;;  %1010 = vmatmul.f32.gmra.mxu1 %v375_v36  ;;  %v380_v37 = vld [vmem:[%s1630_s11 + $0xb8] sm:$0xff] }
  0xd9   : > { %874 = vst.msk [vmem:[%s1793_s27 + $0x10] sm:$0xff] %vm737_vm0, %v810_v38  ;;  %v556_v40 = vpop.f32.mrf.mxu2 }
  0xda   : > { %v1059_v41 = vpop.f32.mrf.mxu3  ;;  %v707_v42 = vadd.f32 %v1787_v9, %v556_v40  ;;  %v842_v43 = vadd.f32 %v1797_v14, %v556_v40  ;;  %1152 = vst.msk [vmem:[%s1803_s23 + $0x10] sm:$0xff] %vm1149_vm1, %v964_v39 }
  0xdb   : > { %v1060_v44 = vadd.f32 %v1779_v6, %v1059_v41 }
  0xdc   : > { %772 = vst.msk [vmem:[%s1785_s20 + $0x110] sm:$0xff] %vm737_vm0, %v707_v42 }
  0xdd   : > { %906 = vst.msk [vmem:[%s1793_s27 + $0x110] sm:$0xff] %vm737_vm0, %v842_v43  ;;  %v463_v46 = vpop.f32.mrf.mxu0  ;;  %v966_v47 = vpop.f32.mrf.mxu1 }
  0xde   : > { %1184 = vst.msk [vmem:[%s1803_s23 + $0x110] sm:$0xff] %vm1149_vm1, %v1060_v44  ;;  %606 = vmatmul.f32.gmra.mxu2 %v408_v45  ;;  %v676_v49 = vadd.f32 %v1772_v3, %v463_v46  ;;  %v811_v50 = vadd.f32 %v1774_v4, %v463_v46  ;;  %v967_v51 = vadd.f32 %v1779_v6, %v966_v47  ;;  %v413_v46 = vld [vmem:[%s1630_s11 + $0x1c0] sm:$0xff] }
  0xdf   : > { %1109 = vmatmul.f32.gmra.mxu3 %v408_v45 }
  0xe0   : > { %741 = vst.msk [vmem:[%s1785_s20 + $0x18] sm:$0xff] %vm737_vm0, %v676_v49  ;;  %510 = vmatmul.f32.gmra.mxu0 %v376_v48  ;;  %1013 = vmatmul.f32.gmra.mxu1 %v376_v48  ;;  %v381_v49 = vld [vmem:[%s1630_s11 + $0xc0] sm:$0xff] }
  0xe1   : > { %875 = vst.msk [vmem:[%s1793_s27 + $0x18] sm:$0xff] %vm737_vm0, %v811_v50  ;;  %v559_v52 = vpop.f32.mrf.mxu2 }
  0xe2   : > { %v1062_v53 = vpop.f32.mrf.mxu3  ;;  %v708_v54 = vadd.f32 %v1787_v9, %v559_v52  ;;  %v843_v55 = vadd.f32 %v1797_v14, %v559_v52  ;;  %1153 = vst.msk [vmem:[%s1803_s23 + $0x18] sm:$0xff] %vm1149_vm1, %v967_v51 }
  0xe3   : > { %v1063_v56 = vadd.f32 %v1779_v6, %v1062_v53 }
  0xe4   : > { %773 = vst.msk [vmem:[%s1785_s20 + $0x118] sm:$0xff] %vm737_vm0, %v708_v54 }
  0xe5   : > { %907 = vst.msk [vmem:[%s1793_s27 + $0x118] sm:$0xff] %vm737_vm0, %v843_v55  ;;  %v466_v58 = vpop.f32.mrf.mxu0  ;;  %v969_v59 = vpop.f32.mrf.mxu1 }
  0xe6   : > { %1185 = vst.msk [vmem:[%s1803_s23 + $0x118] sm:$0xff] %vm1149_vm1, %v1063_v56  ;;  %609 = vmatmul.f32.gmra.mxu2 %v409_v57  ;;  %v677_v61 = vadd.f32 %v1772_v3, %v466_v58  ;;  %v812_v62 = vadd.f32 %v1774_v4, %v466_v58  ;;  %v970_v63 = vadd.f32 %v1779_v6, %v969_v59  ;;  %v414_v58 = vld [vmem:[%s1630_s11 + $0x1c8] sm:$0xff] }
  0xe7   : > { %1112 = vmatmul.f32.gmra.mxu3 %v409_v57 }
  0xe8   : > { %742 = vst.msk [vmem:[%s1785_s20 + $0x20] sm:$0xff] %vm737_vm0, %v677_v61  ;;  %513 = vmatmul.f32.gmra.mxu0 %v377_v60  ;;  %1016 = vmatmul.f32.gmra.mxu1 %v377_v60  ;;  %v382_v61 = vld [vmem:[%s1630_s11 + $0xc8] sm:$0xff] }
  0xe9   : > { %876 = vst.msk [vmem:[%s1793_s27 + $0x20] sm:$0xff] %vm737_vm0, %v812_v62  ;;  %v562_v0 = vpop.f32.mrf.mxu2 }
  0xea   : > { %v1065_v1 = vpop.f32.mrf.mxu3  ;;  %v709_v2 = vadd.f32 %v1787_v9, %v562_v0  ;;  %v844_v5 = vadd.f32 %v1797_v14, %v562_v0  ;;  %1154 = vst.msk [vmem:[%s1803_s23 + $0x20] sm:$0xff] %vm1149_vm1, %v970_v63 }
  0xeb   : > { %v1066_v7 = vadd.f32 %v1779_v6, %v1065_v1 }
  0xec   : > { %774 = vst.msk [vmem:[%s1785_s20 + $0x120] sm:$0xff] %vm737_vm0, %v709_v2 }
  0xed   : > { %908 = vst.msk [vmem:[%s1793_s27 + $0x120] sm:$0xff] %vm737_vm0, %v844_v5  ;;  %v469_v10 = vpop.f32.mrf.mxu0  ;;  %v972_v11 = vpop.f32.mrf.mxu1 }
  0xee   : > { %1186 = vst.msk [vmem:[%s1803_s23 + $0x120] sm:$0xff] %vm1149_vm1, %v1066_v7  ;;  %612 = vmatmul.f32.gmra.mxu2 %v410_v8  ;;  %v678_v13 = vadd.f32 %v1772_v3, %v469_v10  ;;  %v813_v15 = vadd.f32 %v1774_v4, %v469_v10  ;;  %v973_v16 = vadd.f32 %v1779_v6, %v972_v11  ;;  %v415_v10 = vld [vmem:[%s1630_s11 + $0x1d0] sm:$0xff] }
  0xef   : > { %1115 = vmatmul.f32.gmra.mxu3 %v410_v8 }
  0xf0   : > { %743 = vst.msk [vmem:[%s1785_s20 + $0x28] sm:$0xff] %vm737_vm0, %v678_v13  ;;  %516 = vmatmul.f32.gmra.mxu0 %v378_v12  ;;  %1019 = vmatmul.f32.gmra.mxu1 %v378_v12  ;;  %v383_v13 = vld [vmem:[%s1630_s11 + $0xd0] sm:$0xff] }
  0xf1   : > { %877 = vst.msk [vmem:[%s1793_s27 + $0x28] sm:$0xff] %vm737_vm0, %v813_v15  ;;  %v565_v17 = vpop.f32.mrf.mxu2 }
  0xf2   : > { %v1068_v18 = vpop.f32.mrf.mxu3  ;;  %v710_v19 = vadd.f32 %v1787_v9, %v565_v17  ;;  %v845_v20 = vadd.f32 %v1797_v14, %v565_v17  ;;  %1155 = vst.msk [vmem:[%s1803_s23 + $0x28] sm:$0xff] %vm1149_vm1, %v973_v16 }
  0xf3   : > { %v1069_v21 = vadd.f32 %v1779_v6, %v1068_v18 }
  0xf4   : > { %775 = vst.msk [vmem:[%s1785_s20 + $0x128] sm:$0xff] %vm737_vm0, %v710_v19 }
  0xf5   : > { %909 = vst.msk [vmem:[%s1793_s27 + $0x128] sm:$0xff] %vm737_vm0, %v845_v20  ;;  %v472_v23 = vpop.f32.mrf.mxu0  ;;  %v975_v24 = vpop.f32.mrf.mxu1 }
  0xf6   : > { %1187 = vst.msk [vmem:[%s1803_s23 + $0x128] sm:$0xff] %vm1149_vm1, %v1069_v21  ;;  %615 = vmatmul.f32.gmra.mxu2 %v411_v22  ;;  %v679_v26 = vadd.f32 %v1772_v3, %v472_v23  ;;  %v814_v27 = vadd.f32 %v1774_v4, %v472_v23  ;;  %v976_v28 = vadd.f32 %v1779_v6, %v975_v24  ;;  %v416_v23 = vld [vmem:[%s1630_s11 + $0x1d8] sm:$0xff] }
  0xf7   : > { %1118 = vmatmul.f32.gmra.mxu3 %v411_v22 }
  0xf8   : > { %744 = vst.msk [vmem:[%s1785_s20 + $0x30] sm:$0xff] %vm737_vm0, %v679_v26  ;;  %519 = vmatmul.f32.gmra.mxu0 %v379_v25  ;;  %1022 = vmatmul.f32.gmra.mxu1 %v379_v25  ;;  %v384_v26 = vld [vmem:[%s1630_s11 + $0xd8] sm:$0xff] }
  0xf9   : > { %878 = vst.msk [vmem:[%s1793_s27 + $0x30] sm:$0xff] %vm737_vm0, %v814_v27  ;;  %v568_v29 = vpop.f32.mrf.mxu2 }
  0xfa   : > { %v1071_v30 = vpop.f32.mrf.mxu3  ;;  %v711_v31 = vadd.f32 %v1787_v9, %v568_v29  ;;  %v846_v32 = vadd.f32 %v1797_v14, %v568_v29  ;;  %1156 = vst.msk [vmem:[%s1803_s23 + $0x30] sm:$0xff] %vm1149_vm1, %v976_v28 }
  0xfb   : > { %v1072_v33 = vadd.f32 %v1779_v6, %v1071_v30 }
  0xfc   : > { %776 = vst.msk [vmem:[%s1785_s20 + $0x130] sm:$0xff] %vm737_vm0, %v711_v31 }
  0xfd   : > { %910 = vst.msk [vmem:[%s1793_s27 + $0x130] sm:$0xff] %vm737_vm0, %v846_v32  ;;  %v475_v35 = vpop.f32.mrf.mxu0  ;;  %v978_v36 = vpop.f32.mrf.mxu1 }
  0xfe   : > { %1188 = vst.msk [vmem:[%s1803_s23 + $0x130] sm:$0xff] %vm1149_vm1, %v1072_v33  ;;  %618 = vmatmul.f32.gmra.mxu2 %v412_v34  ;;  %v680_v38 = vadd.f32 %v1772_v3, %v475_v35  ;;  %v815_v39 = vadd.f32 %v1774_v4, %v475_v35  ;;  %v979_v40 = vadd.f32 %v1779_v6, %v978_v36  ;;  %v417_v35 = vld [vmem:[%s1630_s11 + $0x1e0] sm:$0xff] }
  0xff   : > { %1121 = vmatmul.f32.gmra.mxu3 %v412_v34 }
 0x100   : > { %745 = vst.msk [vmem:[%s1785_s20 + $0x38] sm:$0xff] %vm737_vm0, %v680_v38  ;;  %522 = vmatmul.f32.gmra.mxu0 %v380_v37  ;;  %1025 = vmatmul.f32.gmra.mxu1 %v380_v37  ;;  %v385_v38 = vld [vmem:[%s1630_s11 + $0xe0] sm:$0xff] }
 0x101   : > { %879 = vst.msk [vmem:[%s1793_s27 + $0x38] sm:$0xff] %vm737_vm0, %v815_v39  ;;  %v571_v41 = vpop.f32.mrf.mxu2 }
 0x102   : > { %v1074_v42 = vpop.f32.mrf.mxu3  ;;  %v712_v43 = vadd.f32 %v1787_v9, %v571_v41  ;;  %v847_v44 = vadd.f32 %v1797_v14, %v571_v41  ;;  %1157 = vst.msk [vmem:[%s1803_s23 + $0x38] sm:$0xff] %vm1149_vm1, %v979_v40 }
 0x103   : > { %v1075_v45 = vadd.f32 %v1779_v6, %v1074_v42 }
 0x104   : > { %777 = vst.msk [vmem:[%s1785_s20 + $0x138] sm:$0xff] %vm737_vm0, %v712_v43 }
 0x105   : > { %911 = vst.msk [vmem:[%s1793_s27 + $0x138] sm:$0xff] %vm737_vm0, %v847_v44  ;;  %v478_v47 = vpop.f32.mrf.mxu0  ;;  %v981_v48 = vpop.f32.mrf.mxu1 }
 0x106   : > { %1189 = vst.msk [vmem:[%s1803_s23 + $0x138] sm:$0xff] %vm1149_vm1, %v1075_v45  ;;  %621 = vmatmul.f32.gmra.mxu2 %v413_v46  ;;  %v681_v50 = vadd.f32 %v1772_v3, %v478_v47  ;;  %v816_v51 = vadd.f32 %v1774_v4, %v478_v47  ;;  %v982_v52 = vadd.f32 %v1779_v6, %v981_v48  ;;  %v418_v47 = vld [vmem:[%s1630_s11 + $0x1e8] sm:$0xff] }
 0x107   : > { %1124 = vmatmul.f32.gmra.mxu3 %v413_v46 }
 0x108   : > { %746 = vst.msk [vmem:[%s1785_s20 + $0x40] sm:$0xff] %vm737_vm0, %v681_v50  ;;  %525 = vmatmul.f32.gmra.mxu0 %v381_v49  ;;  %1028 = vmatmul.f32.gmra.mxu1 %v381_v49  ;;  %v386_v50 = vld [vmem:[%s1630_s11 + $0xe8] sm:$0xff] }
 0x109   : > { %880 = vst.msk [vmem:[%s1793_s27 + $0x40] sm:$0xff] %vm737_vm0, %v816_v51  ;;  %v574_v53 = vpop.f32.mrf.mxu2 }
 0x10a   : > { %v1077_v54 = vpop.f32.mrf.mxu3  ;;  %v713_v55 = vadd.f32 %v1787_v9, %v574_v53  ;;  %v848_v56 = vadd.f32 %v1797_v14, %v574_v53  ;;  %1158 = vst.msk [vmem:[%s1803_s23 + $0x40] sm:$0xff] %vm1149_vm1, %v982_v52 }
 0x10b   : > { %v1078_v57 = vadd.f32 %v1779_v6, %v1077_v54 }
 0x10c   : > { %778 = vst.msk [vmem:[%s1785_s20 + $0x140] sm:$0xff] %vm737_vm0, %v713_v55 }
 0x10d   : > { %912 = vst.msk [vmem:[%s1793_s27 + $0x140] sm:$0xff] %vm737_vm0, %v848_v56  ;;  %v481_v59 = vpop.f32.mrf.mxu0  ;;  %v984_v60 = vpop.f32.mrf.mxu1 }
 0x10e   : > { %1190 = vst.msk [vmem:[%s1803_s23 + $0x140] sm:$0xff] %vm1149_vm1, %v1078_v57  ;;  %624 = vmatmul.f32.gmra.mxu2 %v414_v58  ;;  %v682_v62 = vadd.f32 %v1772_v3, %v481_v59  ;;  %v817_v63 = vadd.f32 %v1774_v4, %v481_v59  ;;  %v985_v0 = vadd.f32 %v1779_v6, %v984_v60  ;;  %v419_v59 = vld [vmem:[%s1630_s11 + $0x1f0] sm:$0xff] }
 0x10f   : > { %1127 = vmatmul.f32.gmra.mxu3 %v414_v58 }
 0x110   : > { %747 = vst.msk [vmem:[%s1785_s20 + $0x48] sm:$0xff] %vm737_vm0, %v682_v62  ;;  %528 = vmatmul.f32.gmra.mxu0 %v382_v61  ;;  %1031 = vmatmul.f32.gmra.mxu1 %v382_v61  ;;  %v387_v62 = vld [vmem:[%s1630_s11 + $0xf0] sm:$0xff] }
 0x111   : > { %881 = vst.msk [vmem:[%s1793_s27 + $0x48] sm:$0xff] %vm737_vm0, %v817_v63  ;;  %v577_v1 = vpop.f32.mrf.mxu2 }
 0x112   : > { %v1080_v2 = vpop.f32.mrf.mxu3  ;;  %v714_v5 = vadd.f32 %v1787_v9, %v577_v1  ;;  %v849_v7 = vadd.f32 %v1797_v14, %v577_v1  ;;  %1159 = vst.msk [vmem:[%s1803_s23 + $0x48] sm:$0xff] %vm1149_vm1, %v985_v0 }
 0x113   : > { %v1081_v8 = vadd.f32 %v1779_v6, %v1080_v2 }
 0x114   : > { %779 = vst.msk [vmem:[%s1785_s20 + $0x148] sm:$0xff] %vm737_vm0, %v714_v5 }
 0x115   : > { %913 = vst.msk [vmem:[%s1793_s27 + $0x148] sm:$0xff] %vm737_vm0, %v849_v7  ;;  %v484_v11 = vpop.f32.mrf.mxu0  ;;  %v987_v12 = vpop.f32.mrf.mxu1 }
 0x116   : > { %1191 = vst.msk [vmem:[%s1803_s23 + $0x148] sm:$0xff] %vm1149_vm1, %v1081_v8  ;;  %627 = vmatmul.f32.gmra.mxu2 %v415_v10  ;;  %v683_v15 = vadd.f32 %v1772_v3, %v484_v11  ;;  %v818_v16 = vadd.f32 %v1774_v4, %v484_v11  ;;  %v988_v17 = vadd.f32 %v1779_v6, %v987_v12  ;;  %v420_v11 = vld [vmem:[%s1630_s11 + $0x1f8] sm:$0xff] }
 0x117   : > { %1130 = vmatmul.f32.gmra.mxu3 %v415_v10 }
 0x118   : > { %748 = vst.msk [vmem:[%s1785_s20 + $0x50] sm:$0xff] %vm737_vm0, %v683_v15  ;;  %531 = vmatmul.f32.gmra.mxu0 %v383_v13  ;;  %1034 = vmatmul.f32.gmra.mxu1 %v383_v13  ;;  %v388_v15 = vld [vmem:[%s1630_s11 + $0xf8] sm:$0xff] }
 0x119   : > { %882 = vst.msk [vmem:[%s1793_s27 + $0x50] sm:$0xff] %vm737_vm0, %v818_v16  ;;  %v580_v18 = vpop.f32.mrf.mxu2 }
 0x11a   : > { %v1083_v19 = vpop.f32.mrf.mxu3  ;;  %v715_v20 = vadd.f32 %v1787_v9, %v580_v18  ;;  %v850_v21 = vadd.f32 %v1797_v14, %v580_v18  ;;  %1160 = vst.msk [vmem:[%s1803_s23 + $0x50] sm:$0xff] %vm1149_vm1, %v988_v17 }
 0x11b   : > { %v1084_v22 = vadd.f32 %v1779_v6, %v1083_v19 }
 0x11c   : > { %780 = vst.msk [vmem:[%s1785_s20 + $0x150] sm:$0xff] %vm737_vm0, %v715_v20 }
 0x11d   : > { %914 = vst.msk [vmem:[%s1793_s27 + $0x150] sm:$0xff] %vm737_vm0, %v850_v21  ;;  %v487_v24 = vpop.f32.mrf.mxu0  ;;  %v990_v25 = vpop.f32.mrf.mxu1 }
 0x11e   : > { %1192 = vst.msk [vmem:[%s1803_s23 + $0x150] sm:$0xff] %vm1149_vm1, %v1084_v22  ;;  %630 = vmatmul.f32.gmra.mxu2 %v416_v23  ;;  %v684_v27 = vadd.f32 %v1772_v3, %v487_v24  ;;  %v819_v28 = vadd.f32 %v1774_v4, %v487_v24  ;;  %v991_v29 = vadd.f32 %v1779_v6, %v990_v25 }
 0x11f   : > { %1133 = vmatmul.f32.gmra.mxu3 %v416_v23 }
 0x120   : > { %749 = vst.msk [vmem:[%s1785_s20 + $0x58] sm:$0xff] %vm737_vm0, %v684_v27  ;;  %534 = vmatmul.f32.gmra.mxu0 %v384_v26  ;;  %1037 = vmatmul.f32.gmra.mxu1 %v384_v26 }
 0x121   : > { %883 = vst.msk [vmem:[%s1793_s27 + $0x58] sm:$0xff] %vm737_vm0, %v819_v28  ;;  %v583_v30 = vpop.f32.mrf.mxu2 }
 0x122   : > { %v1086_v31 = vpop.f32.mrf.mxu3  ;;  %v716_v32 = vadd.f32 %v1787_v9, %v583_v30  ;;  %v851_v33 = vadd.f32 %v1797_v14, %v583_v30  ;;  %1161 = vst.msk [vmem:[%s1803_s23 + $0x58] sm:$0xff] %vm1149_vm1, %v991_v29 }
 0x123   : > { %v1087_v34 = vadd.f32 %v1779_v6, %v1086_v31 }
 0x124   : > { %781 = vst.msk [vmem:[%s1785_s20 + $0x158] sm:$0xff] %vm737_vm0, %v716_v32 }
 0x125   : > { %915 = vst.msk [vmem:[%s1793_s27 + $0x158] sm:$0xff] %vm737_vm0, %v851_v33  ;;  %v490_v36 = vpop.f32.mrf.mxu0  ;;  %v993_v37 = vpop.f32.mrf.mxu1 }
 0x126   : > { %1193 = vst.msk [vmem:[%s1803_s23 + $0x158] sm:$0xff] %vm1149_vm1, %v1087_v34  ;;  %633 = vmatmul.f32.gmra.mxu2 %v417_v35  ;;  %v685_v39 = vadd.f32 %v1772_v3, %v490_v36  ;;  %v820_v40 = vadd.f32 %v1774_v4, %v490_v36  ;;  %v994_v41 = vadd.f32 %v1779_v6, %v993_v37 }
 0x127   : > { %1136 = vmatmul.f32.gmra.mxu3 %v417_v35 }
 0x128   : > { %750 = vst.msk [vmem:[%s1785_s20 + $0x60] sm:$0xff] %vm737_vm0, %v685_v39  ;;  %537 = vmatmul.f32.gmra.mxu0 %v385_v38  ;;  %1040 = vmatmul.f32.gmra.mxu1 %v385_v38 }
 0x129   : > { %884 = vst.msk [vmem:[%s1793_s27 + $0x60] sm:$0xff] %vm737_vm0, %v820_v40  ;;  %v586_v42 = vpop.f32.mrf.mxu2 }
 0x12a   : > { %v1089_v43 = vpop.f32.mrf.mxu3  ;;  %v717_v44 = vadd.f32 %v1787_v9, %v586_v42  ;;  %v852_v45 = vadd.f32 %v1797_v14, %v586_v42  ;;  %1162 = vst.msk [vmem:[%s1803_s23 + $0x60] sm:$0xff] %vm1149_vm1, %v994_v41 }
 0x12b   : > { %v1090_v46 = vadd.f32 %v1779_v6, %v1089_v43 }
 0x12c   : > { %782 = vst.msk [vmem:[%s1785_s20 + $0x160] sm:$0xff] %vm737_vm0, %v717_v44 }
 0x12d   : > { %916 = vst.msk [vmem:[%s1793_s27 + $0x160] sm:$0xff] %vm737_vm0, %v852_v45  ;;  %v493_v48 = vpop.f32.mrf.mxu0  ;;  %v996_v49 = vpop.f32.mrf.mxu1 }
 0x12e   : > { %1194 = vst.msk [vmem:[%s1803_s23 + $0x160] sm:$0xff] %vm1149_vm1, %v1090_v46  ;;  %636 = vmatmul.f32.gmra.mxu2 %v418_v47  ;;  %v686_v51 = vadd.f32 %v1772_v3, %v493_v48  ;;  %v821_v52 = vadd.f32 %v1774_v4, %v493_v48  ;;  %v997_v53 = vadd.f32 %v1779_v6, %v996_v49 }
 0x12f   : > { %1139 = vmatmul.f32.gmra.mxu3 %v418_v47 }
 0x130   : > { %751 = vst.msk [vmem:[%s1785_s20 + $0x68] sm:$0xff] %vm737_vm0, %v686_v51  ;;  %540 = vmatmul.f32.gmra.mxu0 %v386_v50  ;;  %1043 = vmatmul.f32.gmra.mxu1 %v386_v50 }
 0x131   : > { %885 = vst.msk [vmem:[%s1793_s27 + $0x68] sm:$0xff] %vm737_vm0, %v821_v52  ;;  %v589_v54 = vpop.f32.mrf.mxu2 }
 0x132   : > { %v1092_v55 = vpop.f32.mrf.mxu3  ;;  %v718_v56 = vadd.f32 %v1787_v9, %v589_v54  ;;  %v853_v57 = vadd.f32 %v1797_v14, %v589_v54  ;;  %1163 = vst.msk [vmem:[%s1803_s23 + $0x68] sm:$0xff] %vm1149_vm1, %v997_v53 }
 0x133   : > { %v1093_v58 = vadd.f32 %v1779_v6, %v1092_v55 }
 0x134   : > { %783 = vst.msk [vmem:[%s1785_s20 + $0x168] sm:$0xff] %vm737_vm0, %v718_v56 }
 0x135   : > { %917 = vst.msk [vmem:[%s1793_s27 + $0x168] sm:$0xff] %vm737_vm0, %v853_v57  ;;  %v496_v60 = vpop.f32.mrf.mxu0  ;;  %v999_v61 = vpop.f32.mrf.mxu1 }
 0x136   : > { %1195 = vst.msk [vmem:[%s1803_s23 + $0x168] sm:$0xff] %vm1149_vm1, %v1093_v58  ;;  %639 = vmatmul.f32.gmra.mxu2 %v419_v59  ;;  %v687_v63 = vadd.f32 %v1772_v3, %v496_v60  ;;  %v822_v0 = vadd.f32 %v1774_v4, %v496_v60  ;;  %v1000_v1 = vadd.f32 %v1779_v6, %v999_v61 }
 0x137   : > { %1142 = vmatmul.f32.gmra.mxu3 %v419_v59 }
 0x138   : > { %752 = vst.msk [vmem:[%s1785_s20 + $0x70] sm:$0xff] %vm737_vm0, %v687_v63  ;;  %543 = vmatmul.f32.gmra.mxu0 %v387_v62  ;;  %1046 = vmatmul.f32.gmra.mxu1 %v387_v62 }
 0x139   : > { %886 = vst.msk [vmem:[%s1793_s27 + $0x70] sm:$0xff] %vm737_vm0, %v822_v0  ;;  %v592_v2 = vpop.f32.mrf.mxu2 }
 0x13a   : > { %v1095_v5 = vpop.f32.mrf.mxu3  ;;  %v719_v7 = vadd.f32 %v1787_v9, %v592_v2  ;;  %v854_v8 = vadd.f32 %v1797_v14, %v592_v2  ;;  %1164 = vst.msk [vmem:[%s1803_s23 + $0x70] sm:$0xff] %vm1149_vm1, %v1000_v1 }
 0x13b   : > { %v1096_v10 = vadd.f32 %v1779_v6, %v1095_v5 }
 0x13c   : > { %784 = vst.msk [vmem:[%s1785_s20 + $0x170] sm:$0xff] %vm737_vm0, %v719_v7 }
 0x13d   : > { %918 = vst.msk [vmem:[%s1793_s27 + $0x170] sm:$0xff] %vm737_vm0, %v854_v8  ;;  %v499_v12 = vpop.f32.mrf.mxu0  ;;  %v1002_v13 = vpop.f32.mrf.mxu1 }
 0x13e   : > { %1196 = vst.msk [vmem:[%s1803_s23 + $0x170] sm:$0xff] %vm1149_vm1, %v1096_v10  ;;  %642 = vmatmul.f32.gmra.mxu2 %v420_v11  ;;  %v688_v16 = vadd.f32 %v1772_v3, %v499_v12  ;;  %v823_v17 = vadd.f32 %v1774_v4, %v499_v12  ;;  %v1003_v18 = vadd.f32 %v1779_v6, %v1002_v13 }
 0x13f   : > { %1145 = vmatmul.f32.gmra.mxu3 %v420_v11 }
 0x140   : > { %753 = vst.msk [vmem:[%s1785_s20 + $0x78] sm:$0xff] %vm737_vm0, %v688_v16  ;;  %546 = vmatmul.f32.gmra.mxu0 %v388_v15  ;;  %1049 = vmatmul.f32.gmra.mxu1 %v388_v15 }
 0x141   : > { %887 = vst.msk [vmem:[%s1793_s27 + $0x78] sm:$0xff] %vm737_vm0, %v823_v17  ;;  %v595_v19 = vpop.f32.mrf.mxu2 }
 0x142   : > { %v1098_v20 = vpop.f32.mrf.mxu3  ;;  %v720_v21 = vadd.f32 %v1787_v9, %v595_v19  ;;  %v855_v22 = vadd.f32 %v1797_v14, %v595_v19  ;;  %1165 = vst.msk [vmem:[%s1803_s23 + $0x78] sm:$0xff] %vm1149_vm1, %v1003_v18 }
 0x143   : > { %v1099_v23 = vadd.f32 %v1779_v6, %v1098_v20 }
 0x144   : > { %785 = vst.msk [vmem:[%s1785_s20 + $0x178] sm:$0xff] %vm737_vm0, %v720_v21 }
 0x145   : > { %919 = vst.msk [vmem:[%s1793_s27 + $0x178] sm:$0xff] %vm737_vm0, %v855_v22  ;;  %v502_v24 = vpop.f32.mrf.mxu0  ;;  %v1005_v25 = vpop.f32.mrf.mxu1 }
 0x146   : > { %1197 = vst.msk [vmem:[%s1803_s23 + $0x178] sm:$0xff] %vm1149_vm1, %v1099_v23  ;;  %v689_v26 = vadd.f32 %v1772_v3, %v502_v24  ;;  %v824_v27 = vadd.f32 %v1774_v4, %v502_v24  ;;  %v1006_v28 = vadd.f32 %v1779_v6, %v1005_v25 }
 0x148   : > { %754 = vst.msk [vmem:[%s1785_s20 + $0x80] sm:$0xff] %vm737_vm0, %v689_v26 }
 0x149   : > { %888 = vst.msk [vmem:[%s1793_s27 + $0x80] sm:$0xff] %vm737_vm0, %v824_v27  ;;  %v598_v29 = vpop.f32.mrf.mxu2 }
 0x14a   : > { %v1101_v30 = vpop.f32.mrf.mxu3  ;;  %v721_v31 = vadd.f32 %v1787_v9, %v598_v29  ;;  %v856_v32 = vadd.f32 %v1797_v14, %v598_v29  ;;  %1166 = vst.msk [vmem:[%s1803_s23 + $0x80] sm:$0xff] %vm1149_vm1, %v1006_v28 }
 0x14b   : > { %v1102_v33 = vadd.f32 %v1779_v6, %v1101_v30 }
 0x14c   : > { %786 = vst.msk [vmem:[%s1785_s20 + $0x180] sm:$0xff] %vm737_vm0, %v721_v31 }
 0x14d   : > { %920 = vst.msk [vmem:[%s1793_s27 + $0x180] sm:$0xff] %vm737_vm0, %v856_v32  ;;  %v505_v34 = vpop.f32.mrf.mxu0  ;;  %v1008_v35 = vpop.f32.mrf.mxu1 }
 0x14e   : > { %1198 = vst.msk [vmem:[%s1803_s23 + $0x180] sm:$0xff] %vm1149_vm1, %v1102_v33  ;;  %v690_v36 = vadd.f32 %v1772_v3, %v505_v34  ;;  %v825_v37 = vadd.f32 %v1774_v4, %v505_v34  ;;  %v1009_v38 = vadd.f32 %v1779_v6, %v1008_v35 }
 0x150   : > { %755 = vst.msk [vmem:[%s1785_s20 + $0x88] sm:$0xff] %vm737_vm0, %v690_v36 }
 0x151   : > { %889 = vst.msk [vmem:[%s1793_s27 + $0x88] sm:$0xff] %vm737_vm0, %v825_v37  ;;  %v601_v39 = vpop.f32.mrf.mxu2 }
 0x152   : > { %v1104_v40 = vpop.f32.mrf.mxu3  ;;  %v722_v41 = vadd.f32 %v1787_v9, %v601_v39  ;;  %v857_v42 = vadd.f32 %v1797_v14, %v601_v39  ;;  %1167 = vst.msk [vmem:[%s1803_s23 + $0x88] sm:$0xff] %vm1149_vm1, %v1009_v38 }
 0x153   : > { %v1105_v43 = vadd.f32 %v1779_v6, %v1104_v40 }
 0x154   : > { %787 = vst.msk [vmem:[%s1785_s20 + $0x188] sm:$0xff] %vm737_vm0, %v722_v41 }
 0x155   : > { %921 = vst.msk [vmem:[%s1793_s27 + $0x188] sm:$0xff] %vm737_vm0, %v857_v42  ;;  %v508_v44 = vpop.f32.mrf.mxu0  ;;  %v1011_v45 = vpop.f32.mrf.mxu1 }
 0x156   : > { %1199 = vst.msk [vmem:[%s1803_s23 + $0x188] sm:$0xff] %vm1149_vm1, %v1105_v43  ;;  %v691_v46 = vadd.f32 %v1772_v3, %v508_v44  ;;  %v826_v47 = vadd.f32 %v1774_v4, %v508_v44  ;;  %v1012_v48 = vadd.f32 %v1779_v6, %v1011_v45 }
 0x158   : > { %756 = vst.msk [vmem:[%s1785_s20 + $0x90] sm:$0xff] %vm737_vm0, %v691_v46 }
 0x159   : > { %890 = vst.msk [vmem:[%s1793_s27 + $0x90] sm:$0xff] %vm737_vm0, %v826_v47  ;;  %v604_v49 = vpop.f32.mrf.mxu2 }
 0x15a   : > { %v1107_v50 = vpop.f32.mrf.mxu3  ;;  %v723_v51 = vadd.f32 %v1787_v9, %v604_v49  ;;  %v858_v52 = vadd.f32 %v1797_v14, %v604_v49  ;;  %1168 = vst.msk [vmem:[%s1803_s23 + $0x90] sm:$0xff] %vm1149_vm1, %v1012_v48 }
 0x15b   : > { %v1108_v53 = vadd.f32 %v1779_v6, %v1107_v50 }
 0x15c   : > { %788 = vst.msk [vmem:[%s1785_s20 + $0x190] sm:$0xff] %vm737_vm0, %v723_v51 }
 0x15d   : > { %922 = vst.msk [vmem:[%s1793_s27 + $0x190] sm:$0xff] %vm737_vm0, %v858_v52  ;;  %v511_v54 = vpop.f32.mrf.mxu0  ;;  %v1014_v55 = vpop.f32.mrf.mxu1 }
 0x15e   : > { %1200 = vst.msk [vmem:[%s1803_s23 + $0x190] sm:$0xff] %vm1149_vm1, %v1108_v53  ;;  %v692_v56 = vadd.f32 %v1772_v3, %v511_v54  ;;  %v827_v57 = vadd.f32 %v1774_v4, %v511_v54  ;;  %v1015_v58 = vadd.f32 %v1779_v6, %v1014_v55 }
 0x160   : > { %757 = vst.msk [vmem:[%s1785_s20 + $0x98] sm:$0xff] %vm737_vm0, %v692_v56 }
 0x161   : > { %891 = vst.msk [vmem:[%s1793_s27 + $0x98] sm:$0xff] %vm737_vm0, %v827_v57  ;;  %v607_v59 = vpop.f32.mrf.mxu2 }
 0x162   : > { %v1110_v60 = vpop.f32.mrf.mxu3  ;;  %v724_v61 = vadd.f32 %v1787_v9, %v607_v59  ;;  %v859_v62 = vadd.f32 %v1797_v14, %v607_v59  ;;  %1169 = vst.msk [vmem:[%s1803_s23 + $0x98] sm:$0xff] %vm1149_vm1, %v1015_v58 }
 0x163   : > { %v1111_v63 = vadd.f32 %v1779_v6, %v1110_v60 }
 0x164   : > { %789 = vst.msk [vmem:[%s1785_s20 + $0x198] sm:$0xff] %vm737_vm0, %v724_v61 }
 0x165   : > { %923 = vst.msk [vmem:[%s1793_s27 + $0x198] sm:$0xff] %vm737_vm0, %v859_v62  ;;  %v514_v0 = vpop.f32.mrf.mxu0  ;;  %v1017_v1 = vpop.f32.mrf.mxu1 }
 0x166   : > { %1201 = vst.msk [vmem:[%s1803_s23 + $0x198] sm:$0xff] %vm1149_vm1, %v1111_v63  ;;  %v693_v2 = vadd.f32 %v1772_v3, %v514_v0  ;;  %v828_v5 = vadd.f32 %v1774_v4, %v514_v0  ;;  %v1018_v7 = vadd.f32 %v1779_v6, %v1017_v1  ;;  %v2296_v0 = vld [vmem:[%s2431_s5] ss:$0 sm:$0xff] }
 0x168   : > { %758 = vst.msk [vmem:[%s1785_s20 + $0xa0] sm:$0xff] %vm737_vm0, %v693_v2 }
 0x169   : > { %892 = vst.msk [vmem:[%s1793_s27 + $0xa0] sm:$0xff] %vm737_vm0, %v828_v5  ;;  %v610_v8 = vpop.f32.mrf.mxu2 }
 0x16a   : > { %v1113_v10 = vpop.f32.mrf.mxu3  ;;  %v725_v11 = vadd.f32 %v1787_v9, %v610_v8  ;;  %v860_v12 = vadd.f32 %v1797_v14, %v610_v8  ;;  %1170 = vst.msk [vmem:[%s1803_s23 + $0xa0] sm:$0xff] %vm1149_vm1, %v1018_v7 }
 0x16b   : > { %v1114_v13 = vadd.f32 %v1779_v6, %v1113_v10 }
 0x16c   : > { %790 = vst.msk [vmem:[%s1785_s20 + $0x1a0] sm:$0xff] %vm737_vm0, %v725_v11 }
 0x16d   : > { %924 = vst.msk [vmem:[%s1793_s27 + $0x1a0] sm:$0xff] %vm737_vm0, %v860_v12  ;;  %v517_v15 = vpop.f32.mrf.mxu0  ;;  %v1020_v16 = vpop.f32.mrf.mxu1 }
 0x16e   : > { %1202 = vst.msk [vmem:[%s1803_s23 + $0x1a0] sm:$0xff] %vm1149_vm1, %v1114_v13  ;;  %v694_v17 = vadd.f32 %v1772_v3, %v517_v15  ;;  %v829_v18 = vadd.f32 %v1774_v4, %v517_v15  ;;  %v1021_v19 = vadd.f32 %v1779_v6, %v1020_v16 }
 0x170   : > { %759 = vst.msk [vmem:[%s1785_s20 + $0xa8] sm:$0xff] %vm737_vm0, %v694_v17 }
 0x171   : > { %893 = vst.msk [vmem:[%s1793_s27 + $0xa8] sm:$0xff] %vm737_vm0, %v829_v18  ;;  %v613_v20 = vpop.f32.mrf.mxu2 }
 0x172   : > { %v1116_v21 = vpop.f32.mrf.mxu3  ;;  %v726_v22 = vadd.f32 %v1787_v9, %v613_v20  ;;  %v861_v23 = vadd.f32 %v1797_v14, %v613_v20  ;;  %1171 = vst.msk [vmem:[%s1803_s23 + $0xa8] sm:$0xff] %vm1149_vm1, %v1021_v19 }
 0x173   : > { %v1117_v24 = vadd.f32 %v1779_v6, %v1116_v21 }
 0x174   : > { %791 = vst.msk [vmem:[%s1785_s20 + $0x1a8] sm:$0xff] %vm737_vm0, %v726_v22 }
 0x175   : > { %925 = vst.msk [vmem:[%s1793_s27 + $0x1a8] sm:$0xff] %vm737_vm0, %v861_v23  ;;  %v520_v25 = vpop.f32.mrf.mxu0  ;;  %v1023_v26 = vpop.f32.mrf.mxu1 }
 0x176   : > { %1203 = vst.msk [vmem:[%s1803_s23 + $0x1a8] sm:$0xff] %vm1149_vm1, %v1117_v24  ;;  %v695_v27 = vadd.f32 %v1772_v3, %v520_v25  ;;  %v830_v28 = vadd.f32 %v1774_v4, %v520_v25  ;;  %v1024_v29 = vadd.f32 %v1779_v6, %v1023_v26 }
 0x178   : > { %760 = vst.msk [vmem:[%s1785_s20 + $0xb0] sm:$0xff] %vm737_vm0, %v695_v27 }
 0x179   : > { %894 = vst.msk [vmem:[%s1793_s27 + $0xb0] sm:$0xff] %vm737_vm0, %v830_v28  ;;  %v616_v30 = vpop.f32.mrf.mxu2 }
 0x17a   : > { %v1119_v31 = vpop.f32.mrf.mxu3  ;;  %v727_v32 = vadd.f32 %v1787_v9, %v616_v30  ;;  %v862_v33 = vadd.f32 %v1797_v14, %v616_v30  ;;  %1172 = vst.msk [vmem:[%s1803_s23 + $0xb0] sm:$0xff] %vm1149_vm1, %v1024_v29 }
 0x17b   : > { %v1120_v34 = vadd.f32 %v1779_v6, %v1119_v31 }
 0x17c   : > { %792 = vst.msk [vmem:[%s1785_s20 + $0x1b0] sm:$0xff] %vm737_vm0, %v727_v32 }
 0x17d   : > { %926 = vst.msk [vmem:[%s1793_s27 + $0x1b0] sm:$0xff] %vm737_vm0, %v862_v33  ;;  %v523_v35 = vpop.f32.mrf.mxu0  ;;  %v1026_v36 = vpop.f32.mrf.mxu1 }
 0x17e   : > { %1204 = vst.msk [vmem:[%s1803_s23 + $0x1b0] sm:$0xff] %vm1149_vm1, %v1120_v34  ;;  %v696_v37 = vadd.f32 %v1772_v3, %v523_v35  ;;  %v831_v38 = vadd.f32 %v1774_v4, %v523_v35  ;;  %v1027_v39 = vadd.f32 %v1779_v6, %v1026_v36 }
 0x180   : > { %761 = vst.msk [vmem:[%s1785_s20 + $0xb8] sm:$0xff] %vm737_vm0, %v696_v37 }
 0x181   : > { %895 = vst.msk [vmem:[%s1793_s27 + $0xb8] sm:$0xff] %vm737_vm0, %v831_v38  ;;  %v619_v40 = vpop.f32.mrf.mxu2 }
 0x182   : > { %v1122_v41 = vpop.f32.mrf.mxu3  ;;  %v728_v42 = vadd.f32 %v1787_v9, %v619_v40  ;;  %v863_v43 = vadd.f32 %v1797_v14, %v619_v40  ;;  %1173 = vst.msk [vmem:[%s1803_s23 + $0xb8] sm:$0xff] %vm1149_vm1, %v1027_v39 }
 0x183   : > { %v1123_v44 = vadd.f32 %v1779_v6, %v1122_v41 }
 0x184   : > { %793 = vst.msk [vmem:[%s1785_s20 + $0x1b8] sm:$0xff] %vm737_vm0, %v728_v42 }
 0x185   : > { %927 = vst.msk [vmem:[%s1793_s27 + $0x1b8] sm:$0xff] %vm737_vm0, %v863_v43  ;;  %v526_v45 = vpop.f32.mrf.mxu0  ;;  %v1029_v46 = vpop.f32.mrf.mxu1 }
 0x186   : > { %1205 = vst.msk [vmem:[%s1803_s23 + $0x1b8] sm:$0xff] %vm1149_vm1, %v1123_v44  ;;  %v697_v47 = vadd.f32 %v1772_v3, %v526_v45  ;;  %v832_v48 = vadd.f32 %v1774_v4, %v526_v45  ;;  %v1030_v49 = vadd.f32 %v1779_v6, %v1029_v46 }
 0x188   : > { %762 = vst.msk [vmem:[%s1785_s20 + $0xc0] sm:$0xff] %vm737_vm0, %v697_v47 }
 0x189   : > { %896 = vst.msk [vmem:[%s1793_s27 + $0xc0] sm:$0xff] %vm737_vm0, %v832_v48  ;;  %v622_v50 = vpop.f32.mrf.mxu2 }
 0x18a   : > { %v1125_v51 = vpop.f32.mrf.mxu3  ;;  %v729_v52 = vadd.f32 %v1787_v9, %v622_v50  ;;  %v864_v53 = vadd.f32 %v1797_v14, %v622_v50  ;;  %1174 = vst.msk [vmem:[%s1803_s23 + $0xc0] sm:$0xff] %vm1149_vm1, %v1030_v49 }
 0x18b   : > { %v1126_v54 = vadd.f32 %v1779_v6, %v1125_v51 }
 0x18c   : > { %794 = vst.msk [vmem:[%s1785_s20 + $0x1c0] sm:$0xff] %vm737_vm0, %v729_v52 }
 0x18d   : > { %928 = vst.msk [vmem:[%s1793_s27 + $0x1c0] sm:$0xff] %vm737_vm0, %v864_v53  ;;  %v529_v55 = vpop.f32.mrf.mxu0  ;;  %v1032_v56 = vpop.f32.mrf.mxu1 }
 0x18e   : > { %1206 = vst.msk [vmem:[%s1803_s23 + $0x1c0] sm:$0xff] %vm1149_vm1, %v1126_v54  ;;  %v698_v57 = vadd.f32 %v1772_v3, %v529_v55  ;;  %v833_v58 = vadd.f32 %v1774_v4, %v529_v55  ;;  %v1033_v59 = vadd.f32 %v1779_v6, %v1032_v56 }
 0x190   : > { %763 = vst.msk [vmem:[%s1785_s20 + $0xc8] sm:$0xff] %vm737_vm0, %v698_v57 }
 0x191   : > { %897 = vst.msk [vmem:[%s1793_s27 + $0xc8] sm:$0xff] %vm737_vm0, %v833_v58  ;;  %v625_v60 = vpop.f32.mrf.mxu2 }
 0x192   : > { %v1128_v61 = vpop.f32.mrf.mxu3  ;;  %v730_v62 = vadd.f32 %v1787_v9, %v625_v60  ;;  %v865_v63 = vadd.f32 %v1797_v14, %v625_v60  ;;  %1175 = vst.msk [vmem:[%s1803_s23 + $0xc8] sm:$0xff] %vm1149_vm1, %v1033_v59 }
 0x193   : > { %v1129_v6 = vadd.f32 %v2296_v0, %v1128_v61 }
 0x194   : > { %795 = vst.msk [vmem:[%s1785_s20 + $0x1c8] sm:$0xff] %vm737_vm0, %v730_v62 }
 0x195   : > { %929 = vst.msk [vmem:[%s1793_s27 + $0x1c8] sm:$0xff] %vm737_vm0, %v865_v63  ;;  %v532_v1 = vpop.f32.mrf.mxu0  ;;  %v1035_v2 = vpop.f32.mrf.mxu1 }
 0x196   : > { %1207 = vst.msk [vmem:[%s1803_s23 + $0x1c8] sm:$0xff] %vm1149_vm1, %v1129_v6  ;;  %v699_v5 = vadd.f32 %v1772_v3, %v532_v1  ;;  %v834_v7 = vadd.f32 %v1774_v4, %v532_v1  ;;  %v1036_v8 = vadd.f32 %v2296_v0, %v1035_v2 }
 0x198   : > { %764 = vst.msk [vmem:[%s1785_s20 + $0xd0] sm:$0xff] %vm737_vm0, %v699_v5 }
 0x199   : > { %898 = vst.msk [vmem:[%s1793_s27 + $0xd0] sm:$0xff] %vm737_vm0, %v834_v7  ;;  %v628_v10 = vpop.f32.mrf.mxu2 }
 0x19a   : > { %v1131_v11 = vpop.f32.mrf.mxu3  ;;  %v731_v12 = vadd.f32 %v1787_v9, %v628_v10  ;;  %v866_v13 = vadd.f32 %v1797_v14, %v628_v10  ;;  %1176 = vst.msk [vmem:[%s1803_s23 + $0xd0] sm:$0xff] %vm1149_vm1, %v1036_v8 }
 0x19b   : > { %v1132_v15 = vadd.f32 %v2296_v0, %v1131_v11 }
 0x19c   : > { %796 = vst.msk [vmem:[%s1785_s20 + $0x1d0] sm:$0xff] %vm737_vm0, %v731_v12 }
 0x19d   : > { %930 = vst.msk [vmem:[%s1793_s27 + $0x1d0] sm:$0xff] %vm737_vm0, %v866_v13  ;;  %v535_v16 = vpop.f32.mrf.mxu0  ;;  %v1038_v17 = vpop.f32.mrf.mxu1 }
 0x19e   : > { %1208 = vst.msk [vmem:[%s1803_s23 + $0x1d0] sm:$0xff] %vm1149_vm1, %v1132_v15  ;;  %v700_v18 = vadd.f32 %v1772_v3, %v535_v16  ;;  %v835_v19 = vadd.f32 %v1774_v4, %v535_v16  ;;  %v1039_v20 = vadd.f32 %v2296_v0, %v1038_v17 }
 0x1a0   : > { %765 = vst.msk [vmem:[%s1785_s20 + $0xd8] sm:$0xff] %vm737_vm0, %v700_v18 }
 0x1a1   : > { %899 = vst.msk [vmem:[%s1793_s27 + $0xd8] sm:$0xff] %vm737_vm0, %v835_v19  ;;  %v631_v21 = vpop.f32.mrf.mxu2 }
 0x1a2   : > { %v1134_v22 = vpop.f32.mrf.mxu3  ;;  %v732_v23 = vadd.f32 %v1787_v9, %v631_v21  ;;  %v867_v24 = vadd.f32 %v1797_v14, %v631_v21  ;;  %1177 = vst.msk [vmem:[%s1803_s23 + $0xd8] sm:$0xff] %vm1149_vm1, %v1039_v20 }
 0x1a3   : > { %v1135_v25 = vadd.f32 %v2296_v0, %v1134_v22 }
 0x1a4   : > { %797 = vst.msk [vmem:[%s1785_s20 + $0x1d8] sm:$0xff] %vm737_vm0, %v732_v23 }
 0x1a5   : > { %931 = vst.msk [vmem:[%s1793_s27 + $0x1d8] sm:$0xff] %vm737_vm0, %v867_v24  ;;  %v538_v26 = vpop.f32.mrf.mxu0  ;;  %v1041_v27 = vpop.f32.mrf.mxu1 }
 0x1a6   : > { %1209 = vst.msk [vmem:[%s1803_s23 + $0x1d8] sm:$0xff] %vm1149_vm1, %v1135_v25  ;;  %v701_v28 = vadd.f32 %v1772_v3, %v538_v26  ;;  %v836_v29 = vadd.f32 %v1774_v4, %v538_v26  ;;  %v1042_v30 = vadd.f32 %v2296_v0, %v1041_v27 }
 0x1a8   : > { %766 = vst.msk [vmem:[%s1785_s20 + $0xe0] sm:$0xff] %vm737_vm0, %v701_v28 }
 0x1a9   : > { %900 = vst.msk [vmem:[%s1793_s27 + $0xe0] sm:$0xff] %vm737_vm0, %v836_v29  ;;  %v634_v31 = vpop.f32.mrf.mxu2 }
 0x1aa   : > { %v1137_v32 = vpop.f32.mrf.mxu3  ;;  %v733_v33 = vadd.f32 %v1787_v9, %v634_v31  ;;  %v868_v34 = vadd.f32 %v1797_v14, %v634_v31  ;;  %1178 = vst.msk [vmem:[%s1803_s23 + $0xe0] sm:$0xff] %vm1149_vm1, %v1042_v30 }
 0x1ab   : > { %v1138_v35 = vadd.f32 %v2296_v0, %v1137_v32 }
 0x1ac   : > { %798 = vst.msk [vmem:[%s1785_s20 + $0x1e0] sm:$0xff] %vm737_vm0, %v733_v33 }
 0x1ad   : > { %932 = vst.msk [vmem:[%s1793_s27 + $0x1e0] sm:$0xff] %vm737_vm0, %v868_v34  ;;  %v541_v36 = vpop.f32.mrf.mxu0  ;;  %v1044_v37 = vpop.f32.mrf.mxu1 }
 0x1ae   : > { %1210 = vst.msk [vmem:[%s1803_s23 + $0x1e0] sm:$0xff] %vm1149_vm1, %v1138_v35  ;;  %v702_v38 = vadd.f32 %v1772_v3, %v541_v36  ;;  %v837_v39 = vadd.f32 %v1774_v4, %v541_v36  ;;  %v1045_v40 = vadd.f32 %v2296_v0, %v1044_v37 }
 0x1b0   : > { %767 = vst.msk [vmem:[%s1785_s20 + $0xe8] sm:$0xff] %vm737_vm0, %v702_v38 }
 0x1b1   : > { %901 = vst.msk [vmem:[%s1793_s27 + $0xe8] sm:$0xff] %vm737_vm0, %v837_v39  ;;  %v637_v41 = vpop.f32.mrf.mxu2 }
 0x1b2   : > { %v1140_v42 = vpop.f32.mrf.mxu3  ;;  %v734_v43 = vadd.f32 %v1787_v9, %v637_v41  ;;  %v869_v44 = vadd.f32 %v1797_v14, %v637_v41  ;;  %1179 = vst.msk [vmem:[%s1803_s23 + $0xe8] sm:$0xff] %vm1149_vm1, %v1045_v40 }
 0x1b3   : > { %v1141_v45 = vadd.f32 %v2296_v0, %v1140_v42 }
 0x1b4   : > { %799 = vst.msk [vmem:[%s1785_s20 + $0x1e8] sm:$0xff] %vm737_vm0, %v734_v43 }
 0x1b5   : > { %933 = vst.msk [vmem:[%s1793_s27 + $0x1e8] sm:$0xff] %vm737_vm0, %v869_v44  ;;  %v544_v46 = vpop.f32.mrf.mxu0  ;;  %v1047_v47 = vpop.f32.mrf.mxu1 }
 0x1b6   : > { %1211 = vst.msk [vmem:[%s1803_s23 + $0x1e8] sm:$0xff] %vm1149_vm1, %v1141_v45  ;;  %v703_v48 = vadd.f32 %v1772_v3, %v544_v46  ;;  %v838_v49 = vadd.f32 %v1774_v4, %v544_v46  ;;  %v1048_v50 = vadd.f32 %v2296_v0, %v1047_v47 }
 0x1b8   : > { %768 = vst.msk [vmem:[%s1785_s20 + $0xf0] sm:$0xff] %vm737_vm0, %v703_v48 }
 0x1b9   : > { %902 = vst.msk [vmem:[%s1793_s27 + $0xf0] sm:$0xff] %vm737_vm0, %v838_v49  ;;  %v640_v51 = vpop.f32.mrf.mxu2 }
 0x1ba   : > { %v1143_v52 = vpop.f32.mrf.mxu3  ;;  %v735_v53 = vadd.f32 %v1787_v9, %v640_v51  ;;  %v870_v54 = vadd.f32 %v1797_v14, %v640_v51  ;;  %1180 = vst.msk [vmem:[%s1803_s23 + $0xf0] sm:$0xff] %vm1149_vm1, %v1048_v50 }
 0x1bb   : > { %v1144_v55 = vadd.f32 %v2296_v0, %v1143_v52 }
 0x1bc   : > { %800 = vst.msk [vmem:[%s1785_s20 + $0x1f0] sm:$0xff] %vm737_vm0, %v735_v53 }
 0x1bd   : > { %934 = vst.msk [vmem:[%s1793_s27 + $0x1f0] sm:$0xff] %vm737_vm0, %v870_v54  ;;  %v547_v56 = vpop.f32.mrf.mxu0  ;;  %v1050_v57 = vpop.f32.mrf.mxu1 }
 0x1be   : > { %1212 = vst.msk [vmem:[%s1803_s23 + $0x1f0] sm:$0xff] %vm1149_vm1, %v1144_v55  ;;  %v704_v58 = vadd.f32 %v1772_v3, %v547_v56  ;;  %v839_v59 = vadd.f32 %v1774_v4, %v547_v56  ;;  %v1051_v60 = vadd.f32 %v2296_v0, %v1050_v57 }
 0x1c0   : > { %769 = vst.msk [vmem:[%s1785_s20 + $0xf8] sm:$0xff] %vm737_vm0, %v704_v58 }
 0x1c1   : > { %903 = vst.msk [vmem:[%s1793_s27 + $0xf8] sm:$0xff] %vm737_vm0, %v839_v59  ;;  %v643_v61 = vpop.f32.mrf.mxu2 }
 0x1c2   : > { %v1146_v62 = vpop.f32.mrf.mxu3  ;;  %v736_v63 = vadd.f32 %v1787_v9, %v643_v61  ;;  %v871_v6 = vadd.f32 %v1797_v14, %v643_v61  ;;  %1181 = vst.msk [vmem:[%s1803_s23 + $0xf8] sm:$0xff] %vm1149_vm1, %v1051_v60 }
 0x1c3   : > { %v1147_v1 = vadd.f32 %v2296_v0, %v1146_v62 }
 0x1c4   : > { %801 = vst.msk [vmem:[%s1785_s20 + $0x1f8] sm:$0xff] %vm737_vm0, %v736_v63 }
 0x1c5   : > { %935 = vst.msk [vmem:[%s1793_s27 + $0x1f8] sm:$0xff] %vm737_vm0, %v871_v6 }
 0x1c6   : > { %1213 = vst.msk [vmem:[%s1803_s23 + $0x1f8] sm:$0xff] %vm1149_vm1, %v1147_v1 }
 0x1c7 PF: > { %p19_p7 = scmp.ge.s32.totalorder %s1582_s10, 4   ;;  %s2438_s27 = smov %s1503_s28 }
 0x1c8   : > { %s2439_s28 = smov %s1507_s29  ;;  %s2440_s29 = smov %s1592_s13 }
 0x1c9   : > { %s2441_s30 = smov %s1582_s10  ;;  %21 = sbr.rel (!%p19_p7) target bundleno = 3 (0x3), region = 110 }
 0x1ce   :  { %1270 = vsyncpa [#allocation3], 1 }
 0x1cf   :  { %1272 = vsyncpa [#allocation3 + $0x1], 1 }

</bundles_post_ra>
